<compile_context>
chip_gen: v5e
topology: v5e:2x2
jax: 0.10.0
libtpu: 0.0.40
codegen_flags: <defaults>
</compile_context>

<pallas_src>
import functools

import jax
import jax.numpy as jnp
from jax.experimental import pallas as pl
from jax.experimental.pallas import tpu as pltpu


def _round_up(x, n):
    return ((x + n - 1) // n) * n


def _memn2n_kernel(stories_ref, q_ref, A_ref, B_ref, C_ref, H_ref, W_ref,
                   out_ref, *, hops, tile_b, mem_size):
    """One batch tile of the MemN2N forward.

    stories_ref: (tile_b * mem_size, E)  bf16  -- flattened memories for this tile
    q_ref:       (1, E)                  bf16
    A/B/C_ref:   (E, 2E)                 bf16
    H_ref:       (2E, 2E)                bf16
    W_ref:       (2E, K_pad)             bf16  -- lane-padded key projection
    out_ref:     (tile_b, K_pad)         f32
    """
    emb2 = A_ref.shape[1]

    s = stories_ref[...]                                             # bf16
    # One large (tile_b*M, E) x (E, 2E) matmul each; f32 accumulation on MXU.
    m = jnp.dot(s, A_ref[...], preferred_element_type=jnp.float32)   # (TB*M, 2E)
    c = jnp.dot(s, C_ref[...], preferred_element_type=jnp.float32)   # (TB*M, 2E)
    m = m.reshape(tile_b, mem_size, emb2)
    c = c.reshape(tile_b, mem_size, emb2)

    # u_0 = queries @ B, broadcast across the batch tile (queries is shared).
    u0 = jnp.dot(q_ref[...], B_ref[...], preferred_element_type=jnp.float32)
    u = jnp.broadcast_to(u0, (tile_b, emb2))                         # (TB, 2E) f32

    H = H_ref[...]

    # hops is a small static Python int -> unrolled at trace time.
    for _ in range(hops):
        # dotted[b, k] = <m[b, k, :], u[b, :]>   (VPU mul + XLU reduce, f32)
        dotted = jnp.sum(m * u[:, None, :], axis=2)                  # (TB, M)
        # Numerically-stabilized softmax over the memory axis (f32 math; the
        # reciprocal goes to the otherwise-idle EUP slot).
        dotted = dotted - jnp.max(dotted, axis=1, keepdims=True)
        e = jnp.exp(dotted)
        inv = pl.reciprocal(jnp.sum(e, axis=1, keepdims=True), approx=True)
        probs = e * inv
        # o[b, :] = sum_k probs[b, k] * c[b, k, :]
        o = jnp.sum(c * probs[:, :, None], axis=1)                   # (TB, 2E)
        # u_{t+1} = u_t @ H + o   (bf16 MXU operands, f32 accumulation)
        u = jnp.dot(u.astype(H.dtype), H,
                    preferred_element_type=jnp.float32) + o
        # TODO(synk): self._nonlin is None in this config; hook point left out.

    # req = u @ W  -- lane-dense (tile_b, K_pad) store.
    out_ref[...] = jnp.dot(u.astype(W_ref.dtype), W_ref[...],
                           preferred_element_type=jnp.float32)


def memn2n_forward(stories, queries, A, B, C, H, W, *, hops=3, max_tile_b=128):
    batch, mem_size, emb = stories.shape
    emb2 = 2 * emb
    key_size = W.shape[1]
    assert A.shape == (emb, emb2) and B.shape == (emb, emb2) and C.shape == (emb, emb2)
    assert H.shape == (emb2, emb2) and queries.shape == (1, emb)

    # Batch tile: multiple of 8 sublanes, capped (keeps VMEM use modest even on
    # v7x's 64 MiB; with these shapes a 128-row tile is only a few hundred KiB).
    tile_b = min(max_tile_b, _round_up(batch, 8))
    padded_batch = _round_up(batch, tile_b)
    k_pad = _round_up(key_size, 128)   # lane-dense output (no masked vst)

    # Pad batch so the grid divides evenly (zero rows are harmless & sliced off),
    # flatten stories for the big matmul, and cast MXU operands to bf16 so the
    # DMAs move half the bytes and the MXU runs at full bf16 rate.
    stories_p = jnp.pad(stories, ((0, padded_batch - batch), (0, 0), (0, 0)))
    stories_flat = stories_p.reshape(padded_batch * mem_size, emb).astype(jnp.bfloat16)
    q16 = queries.astype(jnp.bfloat16)
    A16 = A.astype(jnp.bfloat16)
    B16 = B.astype(jnp.bfloat16)
    C16 = C.astype(jnp.bfloat16)
    H16 = H.astype(jnp.bfloat16)
    W16 = jnp.pad(W, ((0, 0), (0, k_pad - key_size))).astype(jnp.bfloat16)

    num_tiles = padded_batch // tile_b
    kernel = functools.partial(_memn2n_kernel, hops=hops,
                               tile_b=tile_b, mem_size=mem_size)

    # Advisory cost estimate for the XLA scheduler.
    per_elem_flops = (2 * 2 * mem_size * emb * emb2            # s@A, s@C
                      + hops * (2 * 2 * mem_size * emb2        # dotted + o
                                + 2 * emb2 * emb2)             # u@H
                      + 2 * emb2 * k_pad)                      # u@W
    flops = padded_batch * per_elem_flops + num_tiles * 2 * emb * emb2
    transcendentals = padded_batch * hops * mem_size
    bytes_accessed = (stories_flat.size * 2
                      + num_tiles * 2 * (q16.size + A16.size + B16.size
                                         + C16.size + H16.size + W16.size)
                      + padded_batch * k_pad * 4)
    cost = pl.CostEstimate(flops=int(flops),
                           transcendentals=int(transcendentals),
                           bytes_accessed=int(bytes_accessed))

    out = pl.pallas_call(
        kernel,
        out_shape=jax.ShapeDtypeStruct((padded_batch, k_pad), jnp.float32),
        grid_spec=pltpu.PrefetchScalarGridSpec(
            num_scalar_prefetch=0,
            grid=(num_tiles,),
            in_specs=[
                # flattened memories for this batch tile
                pl.BlockSpec((tile_b * mem_size, emb), lambda b: (b, 0)),
                pl.BlockSpec((1, emb), lambda b: (0, 0)),
                pl.BlockSpec((emb, emb2), lambda b: (0, 0)),
                pl.BlockSpec((emb, emb2), lambda b: (0, 0)),
                pl.BlockSpec((emb, emb2), lambda b: (0, 0)),
                pl.BlockSpec((emb2, emb2), lambda b: (0, 0)),
                pl.BlockSpec((emb2, k_pad), lambda b: (0, 0)),
            ],
            out_specs=pl.BlockSpec((tile_b, k_pad), lambda b: (b, 0)),
        ),
        compiler_params=pltpu.CompilerParams(
            dimension_semantics=("parallel",)),
        cost_estimate=cost,
    )(stories_flat, q16, A16, B16, C16, H16, W16)

    return out[:batch, :key_size]


def memn2n_reference(stories, queries, A, B, C, H, W, *, hops=3):
    """Pure-JAX f32 mirror of the PyTorch forward for correctness checking."""
    batch, mem_size, emb = stories.shape
    emb2 = 2 * emb
    u = jnp.matmul(queries, B)                      # (1, 2E)
    flat = stories.reshape(-1, emb)
    m = jnp.matmul(flat, A).reshape(batch, mem_size, emb2)
    c = jnp.matmul(flat, C).reshape(batch, mem_size, emb2)
    for _ in range(hops):
        u_temp = u[:, None, :]                      # (b or 1, 1, 2E)
        dotted = jnp.sum(m * u_temp, axis=2)        # (batch, M)
        probs = jax.nn.softmax(dotted, axis=1)
        o = jnp.sum(c * probs[:, :, None], axis=1)  # (batch, 2E)
        u = jnp.matmul(u, H) + o                    # (batch, 2E)
    return jnp.matmul(u, W)                         # (batch, K)


if __name__ == "__main__":
    # Small, forward-consistent shapes.
    batch = 2
    embedding_size = 32
    embedding_size_x2 = 2 * embedding_size
    mem_size = 8
    key_size = 16
    meta_size = 4          # unused by forward (kept for parity with __init__)
    hops = 3

    key = jax.random.PRNGKey(0)
    ks = jax.random.split(key, 7)
    std = 0.01
    queries = std * jax.random.normal(ks[0], (1, embedding_size), jnp.float32)
    A = std * jax.random.normal(ks[1], (embedding_size, embedding_size_x2), jnp.float32)
    B = std * jax.random.normal(ks[2], (embedding_size, embedding_size_x2), jnp.float32)
    C = std * jax.random.normal(ks[3], (embedding_size, embedding_size_x2), jnp.float32)
    H = std * jax.random.normal(ks[4], (embedding_size_x2, embedding_size_x2), jnp.float32)
    W = std * jax.random.normal(ks[5], (embedding_size_x2, key_size), jnp.float32)
    stories = jax.random.normal(ks[6], (batch, mem_size, embedding_size), jnp.float32)

    out = memn2n_forward(stories, queries, A, B, C, H, W, hops=hops)
    out = jax.block_until_ready(out)

    ref = memn2n_reference(stories, queries, A, B, C, H, W, hops=hops)
    assert out.shape == (batch, key_size), out.shape
    # Tolerances relaxed for bf16 MXU operands + approx reciprocal (accumulation
    # stays f32); typical max abs error is ~1e-5 at these magnitudes.
    max_err = jnp.max(jnp.abs(out - ref))
    assert jnp.allclose(out, ref, atol=3e-4, rtol=5e-2), f"max abs err = {max_err}"

    print("KERNEL_OK")
</pallas_src>

<mosaic_0001>
module attributes {stable_mosaic.version = 11 : i64} {
  func.func @_memn2n_kernel(%arg0: i32, %arg1: memref<64x32xbf16, #tpu.memory_space<vmem>>, %arg2: memref<1x32xbf16, #tpu.memory_space<vmem>>, %arg3: memref<32x64xbf16, #tpu.memory_space<vmem>>, %arg4: memref<32x64xbf16, #tpu.memory_space<vmem>>, %arg5: memref<32x64xbf16, #tpu.memory_space<vmem>>, %arg6: memref<64x64xbf16, #tpu.memory_space<vmem>>, %arg7: memref<64x128xbf16, #tpu.memory_space<vmem>>, %arg8: memref<8x128xf32, #tpu.memory_space<vmem>>) attributes {dimension_semantics = [#tpu.dimension_semantics<parallel>], iteration_bounds = array<i64: 1>, scalar_prefetch = 0 : i64, scratch_operands = 0 : i64, tpu.core_type = #tpu.core_type<tc>, window_params = [{transform_indices = @transform_0, window_bounds = array<i64: 64, 32>}, {pipeline_mode = #tpu.pipeline_mode<synchronous>, transform_indices = @transform_1, window_bounds = array<i64: 1, 32>}, {pipeline_mode = #tpu.pipeline_mode<synchronous>, transform_indices = @transform_2, window_bounds = array<i64: 32, 64>}, {pipeline_mode = #tpu.pipeline_mode<synchronous>, transform_indices = @transform_3, window_bounds = array<i64: 32, 64>}, {pipeline_mode = #tpu.pipeline_mode<synchronous>, transform_indices = @transform_4, window_bounds = array<i64: 32, 64>}, {pipeline_mode = #tpu.pipeline_mode<synchronous>, transform_indices = @transform_5, window_bounds = array<i64: 64, 64>}, {pipeline_mode = #tpu.pipeline_mode<synchronous>, transform_indices = @transform_6, window_bounds = array<i64: 64, 128>}, {transform_indices = @transform_7, window_bounds = array<i64: 8, 128>}]} {
    %c0 = arith.constant 0 : index
    %c0_0 = arith.constant 0 : index
    %0 = vector.load %arg1[%c0, %c0_0] : memref<64x32xbf16, #tpu.memory_space<vmem>>, vector<64x32xbf16>
    %c0_1 = arith.constant 0 : index
    %c0_2 = arith.constant 0 : index
    %1 = vector.load %arg3[%c0_1, %c0_2] : memref<32x64xbf16, #tpu.memory_space<vmem>>, vector<32x64xbf16>
    %cst = arith.constant dense<0.000000e+00> : vector<64x64xf32>
    %2 = tpu.matmul %0, %1, %cst {dimension_numbers = #tpu.dot_dimension_numbers<[1], [0], [0], [1], [0, 0, 1, 1], [], []>} : vector<64x32xbf16>, vector<32x64xbf16>, vector<64x64xf32> -> vector<64x64xf32>
    %c0_3 = arith.constant 0 : index
    %c0_4 = arith.constant 0 : index
    %3 = vector.load %arg5[%c0_3, %c0_4] : memref<32x64xbf16, #tpu.memory_space<vmem>>, vector<32x64xbf16>
    %cst_5 = arith.constant dense<0.000000e+00> : vector<64x64xf32>
    %4 = tpu.matmul %0, %3, %cst_5 {dimension_numbers = #tpu.dot_dimension_numbers<[1], [0], [0], [1], [0, 0, 1, 1], [], []>} : vector<64x32xbf16>, vector<32x64xbf16>, vector<64x64xf32> -> vector<64x64xf32>
    %5 = vector.shape_cast %2 : vector<64x64xf32> to vector<8x8x64xf32>
    %6 = vector.shape_cast %4 : vector<64x64xf32> to vector<8x8x64xf32>
    %c0_6 = arith.constant 0 : index
    %c0_7 = arith.constant 0 : index
    %7 = vector.load %arg2[%c0_6, %c0_7] : memref<1x32xbf16, #tpu.memory_space<vmem>>, vector<1x32xbf16>
    %c0_8 = arith.constant 0 : index
    %c0_9 = arith.constant 0 : index
    %8 = vector.load %arg4[%c0_8, %c0_9] : memref<32x64xbf16, #tpu.memory_space<vmem>>, vector<32x64xbf16>
    %cst_10 = arith.constant dense<0.000000e+00> : vector<1x64xf32>
    %9 = tpu.matmul %7, %8, %cst_10 {dimension_numbers = #tpu.dot_dimension_numbers<[1], [0], [0], [1], [0, 0, 1, 1], [], []>} : vector<1x32xbf16>, vector<32x64xbf16>, vector<1x64xf32> -> vector<1x64xf32>
    %10 = vector.shape_cast %9 : vector<1x64xf32> to vector<1x64xf32>
    %11 = vector.broadcast %10 : vector<1x64xf32> to vector<8x64xf32>
    %c0_11 = arith.constant 0 : index
    %c0_12 = arith.constant 0 : index
    %12 = vector.load %arg6[%c0_11, %c0_12] : memref<64x64xbf16, #tpu.memory_space<vmem>>, vector<64x64xbf16>
    %13 = vector.shape_cast %11 : vector<8x64xf32> to vector<8x1x64xf32>
    %14 = vector.broadcast %13 : vector<8x1x64xf32> to vector<8x8x64xf32>
    %15 = arith.mulf %5, %14 : vector<8x8x64xf32>
    %cst_13 = arith.constant dense<0.000000e+00> : vector<8x8xf32>
    %16 = vector.multi_reduction <add>, %15, %cst_13 [2] : vector<8x8x64xf32> to vector<8x8xf32>
    %cst_14 = arith.constant dense<0xFF800000> : vector<8xf32>
    %17 = vector.multi_reduction <maximumf>, %16, %cst_14 [1] : vector<8x8xf32> to vector<8xf32>
    %18 = vector.shape_cast %17 : vector<8xf32> to vector<8x1xf32>
    %19 = vector.broadcast %18 : vector<8x1xf32> to vector<8x8xf32>
    %20 = arith.subf %16, %19 : vector<8x8xf32>
    %21 = math.exp %20 : vector<8x8xf32>
    %cst_15 = arith.constant dense<0.000000e+00> : vector<8xf32>
    %22 = vector.multi_reduction <add>, %21, %cst_15 [1] : vector<8x8xf32> to vector<8xf32>
    %23 = vector.shape_cast %22 : vector<8xf32> to vector<8x1xf32>
    %24 = tpu.reciprocal %23 {approx = true} : vector<8x1xf32> -> vector<8x1xf32>
    %25 = vector.broadcast %24 : vector<8x1xf32> to vector<8x8xf32>
    %26 = arith.mulf %21, %25 : vector<8x8xf32>
    %27 = vector.shape_cast %26 : vector<8x8xf32> to vector<8x8x1xf32>
    %28 = vector.broadcast %27 : vector<8x8x1xf32> to vector<8x8x64xf32>
    %29 = arith.mulf %6, %28 : vector<8x8x64xf32>
    %cst_16 = arith.constant dense<0.000000e+00> : vector<8x64xf32>
    %30 = vector.multi_reduction <add>, %29, %cst_16 [1] : vector<8x8x64xf32> to vector<8x64xf32>
    %31 = arith.truncf %11 : vector<8x64xf32> to vector<8x64xbf16>
    %cst_17 = arith.constant dense<0.000000e+00> : vector<8x64xf32>
    %32 = tpu.matmul %31, %12, %cst_17 {dimension_numbers = #tpu.dot_dimension_numbers<[1], [0], [0], [1], [0, 0, 1, 1], [], []>} : vector<8x64xbf16>, vector<64x64xbf16>, vector<8x64xf32> -> vector<8x64xf32>
    %33 = arith.addf %32, %30 : vector<8x64xf32>
    %34 = vector.shape_cast %33 : vector<8x64xf32> to vector<8x1x64xf32>
    %35 = vector.broadcast %34 : vector<8x1x64xf32> to vector<8x8x64xf32>
    %36 = arith.mulf %5, %35 : vector<8x8x64xf32>
    %cst_18 = arith.constant dense<0.000000e+00> : vector<8x8xf32>
    %37 = vector.multi_reduction <add>, %36, %cst_18 [2] : vector<8x8x64xf32> to vector<8x8xf32>
    %cst_19 = arith.constant dense<0xFF800000> : vector<8xf32>
    %38 = vector.multi_reduction <maximumf>, %37, %cst_19 [1] : vector<8x8xf32> to vector<8xf32>
    %39 = vector.shape_cast %38 : vector<8xf32> to vector<8x1xf32>
    %40 = vector.broadcast %39 : vector<8x1xf32> to vector<8x8xf32>
    %41 = arith.subf %37, %40 : vector<8x8xf32>
    %42 = math.exp %41 : vector<8x8xf32>
    %cst_20 = arith.constant dense<0.000000e+00> : vector<8xf32>
    %43 = vector.multi_reduction <add>, %42, %cst_20 [1] : vector<8x8xf32> to vector<8xf32>
    %44 = vector.shape_cast %43 : vector<8xf32> to vector<8x1xf32>
    %45 = tpu.reciprocal %44 {approx = true} : vector<8x1xf32> -> vector<8x1xf32>
    %46 = vector.broadcast %45 : vector<8x1xf32> to vector<8x8xf32>
    %47 = arith.mulf %42, %46 : vector<8x8xf32>
    %48 = vector.shape_cast %47 : vector<8x8xf32> to vector<8x8x1xf32>
    %49 = vector.broadcast %48 : vector<8x8x1xf32> to vector<8x8x64xf32>
    %50 = arith.mulf %6, %49 : vector<8x8x64xf32>
    %cst_21 = arith.constant dense<0.000000e+00> : vector<8x64xf32>
    %51 = vector.multi_reduction <add>, %50, %cst_21 [1] : vector<8x8x64xf32> to vector<8x64xf32>
    %52 = arith.truncf %33 : vector<8x64xf32> to vector<8x64xbf16>
    %cst_22 = arith.constant dense<0.000000e+00> : vector<8x64xf32>
    %53 = tpu.matmul %52, %12, %cst_22 {dimension_numbers = #tpu.dot_dimension_numbers<[1], [0], [0], [1], [0, 0, 1, 1], [], []>} : vector<8x64xbf16>, vector<64x64xbf16>, vector<8x64xf32> -> vector<8x64xf32>
    %54 = arith.addf %53, %51 : vector<8x64xf32>
    %55 = vector.shape_cast %54 : vector<8x64xf32> to vector<8x1x64xf32>
    %56 = vector.broadcast %55 : vector<8x1x64xf32> to vector<8x8x64xf32>
    %57 = arith.mulf %5, %56 : vector<8x8x64xf32>
    %cst_23 = arith.constant dense<0.000000e+00> : vector<8x8xf32>
    %58 = vector.multi_reduction <add>, %57, %cst_23 [2] : vector<8x8x64xf32> to vector<8x8xf32>
    %cst_24 = arith.constant dense<0xFF800000> : vector<8xf32>
    %59 = vector.multi_reduction <maximumf>, %58, %cst_24 [1] : vector<8x8xf32> to vector<8xf32>
    %60 = vector.shape_cast %59 : vector<8xf32> to vector<8x1xf32>
    %61 = vector.broadcast %60 : vector<8x1xf32> to vector<8x8xf32>
    %62 = arith.subf %58, %61 : vector<8x8xf32>
    %63 = math.exp %62 : vector<8x8xf32>
    %cst_25 = arith.constant dense<0.000000e+00> : vector<8xf32>
    %64 = vector.multi_reduction <add>, %63, %cst_25 [1] : vector<8x8xf32> to vector<8xf32>
    %65 = vector.shape_cast %64 : vector<8xf32> to vector<8x1xf32>
    %66 = tpu.reciprocal %65 {approx = true} : vector<8x1xf32> -> vector<8x1xf32>
    %67 = vector.broadcast %66 : vector<8x1xf32> to vector<8x8xf32>
    %68 = arith.mulf %63, %67 : vector<8x8xf32>
    %69 = vector.shape_cast %68 : vector<8x8xf32> to vector<8x8x1xf32>
    %70 = vector.broadcast %69 : vector<8x8x1xf32> to vector<8x8x64xf32>
    %71 = arith.mulf %6, %70 : vector<8x8x64xf32>
    %cst_26 = arith.constant dense<0.000000e+00> : vector<8x64xf32>
    %72 = vector.multi_reduction <add>, %71, %cst_26 [1] : vector<8x8x64xf32> to vector<8x64xf32>
    %73 = arith.truncf %54 : vector<8x64xf32> to vector<8x64xbf16>
    %cst_27 = arith.constant dense<0.000000e+00> : vector<8x64xf32>
    %74 = tpu.matmul %73, %12, %cst_27 {dimension_numbers = #tpu.dot_dimension_numbers<[1], [0], [0], [1], [0, 0, 1, 1], [], []>} : vector<8x64xbf16>, vector<64x64xbf16>, vector<8x64xf32> -> vector<8x64xf32>
    %75 = arith.addf %74, %72 : vector<8x64xf32>
    %76 = arith.truncf %75 : vector<8x64xf32> to vector<8x64xbf16>
    %c0_28 = arith.constant 0 : index
    %c0_29 = arith.constant 0 : index
    %77 = vector.load %arg7[%c0_28, %c0_29] : memref<64x128xbf16, #tpu.memory_space<vmem>>, vector<64x128xbf16>
    %cst_30 = arith.constant dense<0.000000e+00> : vector<8x128xf32>
    %78 = tpu.matmul %76, %77, %cst_30 {dimension_numbers = #tpu.dot_dimension_numbers<[1], [0], [0], [1], [0, 0, 1, 1], [], []>} : vector<8x64xbf16>, vector<64x128xbf16>, vector<8x128xf32> -> vector<8x128xf32>
    %c0_31 = arith.constant 0 : index
    %c0_32 = arith.constant 0 : index
    %79 = vector.load %arg8[%c0_31, %c0_32] : memref<8x128xf32, #tpu.memory_space<vmem>>, vector<8x128xf32>
    tpu.vector_store %arg8[%c0_31, %c0_32], %78 {strides = array<i32>} : memref<8x128xf32, #tpu.memory_space<vmem>>, vector<8x128xf32>,
    return
  }
  func.func @transform_0(%arg0: i32) -> (i32, i32) {
    %c0_i32 = arith.constant 0 : i32
    %c0_i32_0 = arith.constant 0 : i32
    return %arg0, %c0_i32 : i32, i32
  }
  func.func @transform_1(%arg0: i32) -> (i32, i32) {
    %c0_i32 = arith.constant 0 : i32
    %c0_i32_0 = arith.constant 0 : i32
    %c0_i32_1 = arith.constant 0 : i32
    return %c0_i32, %c0_i32_0 : i32, i32
  }
  func.func @transform_2(%arg0: i32) -> (i32, i32) {
    %c0_i32 = arith.constant 0 : i32
    %c0_i32_0 = arith.constant 0 : i32
    %c0_i32_1 = arith.constant 0 : i32
    return %c0_i32, %c0_i32_0 : i32, i32
  }
  func.func @transform_3(%arg0: i32) -> (i32, i32) {
    %c0_i32 = arith.constant 0 : i32
    %c0_i32_0 = arith.constant 0 : i32
    %c0_i32_1 = arith.constant 0 : i32
    return %c0_i32, %c0_i32_0 : i32, i32
  }
  func.func @transform_4(%arg0: i32) -> (i32, i32) {
    %c0_i32 = arith.constant 0 : i32
    %c0_i32_0 = arith.constant 0 : i32
    %c0_i32_1 = arith.constant 0 : i32
    return %c0_i32, %c0_i32_0 : i32, i32
  }
  func.func @transform_5(%arg0: i32) -> (i32, i32) {
    %c0_i32 = arith.constant 0 : i32
    %c0_i32_0 = arith.constant 0 : i32
    %c0_i32_1 = arith.constant 0 : i32
    return %c0_i32, %c0_i32_0 : i32, i32
  }
  func.func @transform_6(%arg0: i32) -> (i32, i32) {
    %c0_i32 = arith.constant 0 : i32
    %c0_i32_0 = arith.constant 0 : i32
    %c0_i32_1 = arith.constant 0 : i32
    return %c0_i32, %c0_i32_0 : i32, i32
  }
  func.func @transform_7(%arg0: i32) -> (i32, i32) {
    %c0_i32 = arith.constant 0 : i32
    %c0_i32_0 = arith.constant 0 : i32
    return %arg0, %c0_i32 : i32, i32
  }
}

</mosaic_0001>

<bundles_post_ra>
// kernel: tpu_custom_call.1
= control target key start
LH: loop header
LB: loop body
LE: loop exit
PB: predicated region body
PF: predicated region fallthrough
CT: control target
= control target key end

     0   :  { %12 = vsyncpa [#allocation3], 0  ;;  %s2027_s0 = inlined_call_operand.vmem [shape: bf16[64,32], index: 0, kind: input, shape index: {}]   ;;  %s2028_s1 = inlined_call_operand.vmem [shape: bf16[1,32], index: 1, kind: input, shape index: {}]   ;;  %s2029_s2 = inlined_call_operand.vmem [shape: bf16[32,64], index: 2, kind: input, shape index: {}]   ;;  %s2030_s3 = inlined_call_operand.hbm [shape: bf16[32,64], index: 3, kind: input, shape index: {}]   ;;  %s2031_s4 = inlined_call_operand.hbm [shape: bf16[32,64], index: 4, kind: input, shape index: {}]   ;;  %s2032_s5 = inlined_call_operand.vmem [shape: bf16[64,64], index: 5, kind: input, shape index: {}]   ;;  %s2033_s6 = inlined_call_operand.hbm [shape: bf16[64,128], index: 6, kind: input, shape index: {}]   ;;  %s2034_s7 = inlined_call_operand.hbm [shape: f32[8,128], index: 7, kind: output, shape index: {}]  }
   0x1   :  { %13 = vsyncpa [#allocation6], 0 }
   0x2   :  { %14 = vsyncpa [#allocation4], 0  ;;  %s38_s26 = sshll.u32 %s2031_s4, 4  ;;  %s1634_s27 = smov [#allocation5]   ;;  %s39_s26 = int_to_ptr.hbm [resolvable:$true] %s38_s26 }
   0x3   :  { %s40_s28 = sshll.u32 %s1634_s27, 4  ;;  %s25_s8 = sshll.u32 %s2030_s3, 4  ;;  %s41_s28 = int_to_ptr.vmem [resolvable:$true] %s40_s28  ;;  %s26_s8 = int_to_ptr.hbm [resolvable:$true] %s25_s8 }
   0x4   :  { %s1635_s9 = smov 64   ;;  %s1636_s10 = smov 4  }
   0x5   :  { %46 = dma.hbm_to_vmem [thread:$0]  %s39_s26, 256, %s41_s28, [#allocation6], %s1635_s9, %s1635_s9, %s1636_s10  }
   0x6   :  { %s1637_s11 = smov [#allocation2]   ;;  %s53_s15 = sshll.u32 %s2033_s6, 4  ;;  %s54_s15 = int_to_ptr.hbm [resolvable:$true] %s53_s15 }
   0x7   :  { %s27_s12 = sshll.u32 %s1637_s11, 4  ;;  %s1638_s4 = smov [#allocation7]   ;;  %s28_s12 = int_to_ptr.vmem [resolvable:$true] %s27_s12 }
   0x8   :  { %33 = dma.hbm_to_vmem [thread:$0]  %s26_s8, 256, %s28_s12, [#allocation3], %s1635_s9, %s1635_s9, %s1636_s10  }
   0x9   :  { %s55_s16 = sshll.u32 %s1638_s4, 4  ;;  %s56_s16 = int_to_ptr.vmem [resolvable:$true] %s55_s16 }
   0xa   :  { %61 = dma.hbm_to_vmem [thread:$0]  %s54_s15, 512, %s56_s16, [#allocation6], %s1635_s9, %s1635_s9, %s1636_s10  }
   0xb   :  { %1628 = dma.done.wait [#allocation3], 256  }
   0xc   :  { %1629 = vsyncadd [#allocation3], 4294967040 }
   0xd   :  { %1630 = dma.done.wait [#allocation6], 768  }
   0xe   :  { %1631 = vsyncadd [#allocation6], 4294966528  ;;  %v1455_v0 = vld [vmem:[%s2029_s2 + $0x8] sm:$0xff]  ;;  %v1454_v2 = vld [vmem:[%s2029_s2] sm:$0xff]  ;;  %vm119_vm0 = vcmask 261120   ;;  %vm280_vm1 = vcmask 523264   ;;  %v313_v61 = vlaneseq }
   0xf   :  { %v1459_v1 = vld [vmem:[#allocation2 + $0x8] sm:$0xff]  ;;  %138 = vmatpush.bf16.msra.mxu0 %v1455_v0  ;;  %v1458_v3 = vld [vmem:[#allocation2] sm:$0xff]  ;;  %v1717_v7 = vld [vmem:[%s2027_s0 + $0x10] sm:$0xff]  ;;  %vm323_vm2 = vcmask 1041409   ;;  %vm325_vm3 = vcmask 1042434   ;;  %vm327_vm4 = vcmask 1043459  }
  0x10   :  { %232 = vmatpush.bf16.msra.mxu2 %v1459_v1  ;;  %v1699_v4 = vld [vmem:[%s2027_s0] sm:$0xff]  ;;  %v1710_v6 = vld [vmem:[%s2027_s0 + $0x8] sm:$0xff]  ;;  %v1724_v8 = vld [vmem:[%s2027_s0 + $0x18] sm:$0xff]  ;;  %v1775_v63 = vand.u32 127, %v313_v61  ;;  %vm329_vm5 = vcmask 1044484   ;;  %vm331_vm6 = vcmask 1045509  }
  0x11   :  { %v206_v5 = vld [vmem:[%s2028_s1] sm:$0x1]  ;;  %v1463_v9 = vld [vmem:[%s2032_s5 + $0x18] sm:$0xff]  ;;  %v1462_v10 = vld [vmem:[%s2032_s5 + $0x10] sm:$0xff]  ;;  %vm333_vm7 = vcmask 1046534   ;;  %vm335_vm8 = vcmask 1047559  }
  0x12   :  { %612 = vmatpush.bf16.msra.mxu3 %v1463_v9  ;;  %v1461_v11 = vld [vmem:[%s2032_s5 + $0x8] sm:$0xff]  ;;  %v1460_v12 = vld [vmem:[%s2032_s5] sm:$0xff]  ;;  %vm338_vm9 = vcmask 64512   ;;  %s1640_s5 = smov [#allocation8]   ;;  %s1354_s14 = sshll.u32 %s2034_s7, 4  ;;  %s1355_s14 = int_to_ptr.hbm [resolvable:$true] %s1354_s14 }
  0x13   :  { %139 = vmatpush.bf16.msra.mxu0 %v1454_v2  ;;  %s1352_s11 = sshll.u32 %s1640_s5, 4  ;;  %s1353_s11 = int_to_ptr.vmem [resolvable:$true] %s1352_s11 }
  0x14   :  { %233 = vmatpush.bf16.msra.mxu2 %v1458_v3 }
  0x16   :  { %1389 = vmatmul.msk.bf16.vlgmr.msra.gmra.mxu0 %vm119_vm0, %v1699_v4  ;;  %613 = vmatpush.bf16.msra.mxu3 %v1462_v10 }
  0x17   :  { %1413 = vmatmul.msk.bf16.vlgmr.msra.gmra.mxu2 %vm119_vm0, %v206_v5 }
  0x18   :  { %950 = vmatpush.bf16.msrb.mxu2 %v1463_v9 }
  0x1a   :  { %614 = vmatpush.bf16.msra.mxu3 %v1461_v11 }
  0x1c   :  { %951 = vmatpush.bf16.msrb.mxu2 %v1462_v10 }
  0x1e   :  { %615 = vmatpush.bf16.msra.mxu3 %v1460_v12 }
  0x20   :  { %952 = vmatpush.bf16.msrb.mxu2 %v1461_v11 }
  0x22   :  { %1288 = vmatpush.bf16.msrb.mxu3 %v1463_v9 }
  0x24   :  { %953 = vmatpush.bf16.msrb.mxu2 %v1460_v12 }
  0x26   :  { %1390 = vmatmul.msk.bf16.gmra.mxu0 %vm119_vm0, %v1710_v6  ;;  %1289 = vmatpush.bf16.msrb.mxu3 %v1462_v10 }
  0x2a   :  { %1290 = vmatpush.bf16.msrb.mxu3 %v1461_v11 }
  0x2e   :  { %1291 = vmatpush.bf16.msrb.mxu3 %v1460_v12 }
  0x36   :  { %1391 = vmatmul.msk.bf16.gmra.mxu0 %vm119_vm0, %v1717_v7 }
  0x46   :  { %1392 = vmatmul.msk.bf16.gmra.mxu0 %vm119_vm0, %v1724_v8 }
  0x93   :  { %v1740_v13 = vpop.f32.mrf.mxu0 }
  0x9a   :  { %v235_v14 = vpop.f32.mrf.mxu2 }
  0x9b   :  { %v239_v15 = vperm.slane %v235_v14, 0  ;;  %v1742_v16 = vpop.f32.mrf.mxu0 }
  0x9d   :  { %v256_v17 = vperm.slane %v239_v15, 0  ;;  %v250_v18 = vrot.slane %v239_v15, 2  ;;  %v249_v19 = vrot.slane %v239_v15, 1  ;;  %v564_v20 = vpack.c.bf16 %v239_v15, %v239_v15 }
  0x9e   :  { %v251_v29 = vrot.slane %v239_v15, 3  ;;  %v252_v35 = vrot.slane %v239_v15, 4  ;;  %v253_v40 = vrot.slane %v239_v15, 5  ;;  %v254_v46 = vrot.slane %v239_v15, 6 }
  0x9f   :  { %v272_v21 = vmul.f32 %v256_v17, %v1740_v13  ;;  %1430 = vmatmul.msk.bf16.vlgmr.msra.gmra.mxu3 %vm280_vm1, %v564_v20  ;;  %v258_v23 = vperm.slane %v250_v18, 0  ;;  %v257_v24 = vperm.slane %v249_v19, 0  ;;  %v255_v51 = vrot.slane %v239_v15, 7 }
  0xa0   :  { %v259_v32 = vperm.slane %v251_v29, 0  ;;  %v260_v37 = vperm.slane %v252_v35, 0  ;;  %v261_v42 = vperm.slane %v253_v40, 0  ;;  %v262_v47 = vperm.slane %v254_v46, 0 }
  0xa1   :  { %v281_v22 = vsel %vm280_vm1, %v272_v21, 0.0  ;;  %v273_v28 = vmul.f32 %v257_v24, %v1742_v16  ;;  %v263_v52 = vperm.slane %v255_v51, 0 }
  0xa2   :  { %282 = vadd.xlane.f32.xlu0 %v281_v22  ;;  %v237_v25 = vpop.f32.mrf.mxu2 }
  0xa3   :  { %v1747_v26 = vpop.f32.mrf.mxu0  ;;  %v284_v31 = vsel %vm280_vm1, %v273_v28, 0.0 }
  0xa4   :  { %v274_v27 = vmul.f32 %v258_v23, %v1747_v26 }
  0xa6   :  { %v287_v30 = vsel %vm280_vm1, %v274_v27, 0.0  ;;  %v1639_v27 = vmov 0  }
  0xa7   :  { %288 = vadd.xlane.f32.xlu1 %v287_v30  ;;  %1477 = vset.pattern.permute.xlu2 %v1639_v27 }
  0xa8   :  { %1476 = vset.pattern.permute.xlu1 %v1639_v27  ;;  %1475 = vset.pattern.permute.xlu0 %v1639_v27 }
  0xaa   :  { %285 = vadd.xlane.f32.xlu0 %v284_v31 }
  0xab   :  { %v1753_v33 = vpop.f32.mrf.mxu0 }
  0xac   :  { %v275_v34 = vmul.f32 %v259_v32, %v1753_v33 }
  0xae   :  { %v290_v36 = vsel %vm280_vm1, %v275_v34, 0.0 }
  0xaf   :  { %291 = vadd.xlane.f32.xlu1 %v290_v36 }
  0xb3   :  { %v1757_v38 = vpop.f32.mrf.mxu0 }
  0xb4   :  { %v276_v39 = vmul.f32 %v260_v37, %v1757_v38 }
  0xb6   :  { %v293_v41 = vsel %vm280_vm1, %v276_v39, 0.0 }
  0xb7   :  { %294 = vadd.xlane.f32.xlu2 %v293_v41 }
  0xbb   :  { %v1761_v43 = vpop.f32.mrf.mxu0 }
  0xbc   :  { %v277_v44 = vmul.f32 %v261_v42, %v1761_v43 }
  0xbe   :  { %v296_v45 = vsel %vm280_vm1, %v277_v44, 0.0 }
  0xbf   :  { %297 = vadd.xlane.f32.xlu2 %v296_v45 }
  0xc3   :  { %v1765_v48 = vpop.f32.mrf.mxu0 }
  0xc4   :  { %v278_v49 = vmul.f32 %v262_v47, %v1765_v48 }
  0xc6   :  { %v299_v50 = vsel %vm280_vm1, %v278_v49, 0.0 }
  0xc7   :  { %300 = vadd.xlane.f32.xlu0 %v299_v50 }
  0xcb   :  { %v1769_v53 = vpop.f32.mrf.mxu0 }
  0xcc   :  { %v279_v54 = vmul.f32 %v263_v52, %v1769_v53 }
  0xce   :  { %v302_v55 = vsel %vm280_vm1, %v279_v54, 0.0 }
  0xcf   :  { %303 = vadd.xlane.f32.xlu1 %v302_v55 }
 0x115   :  { %v283_v58 = vpop.xlane.xlu0 %282 }
 0x116   :  { %v315_v2 = vperm.slane %v283_v58, %v1775_v63 }
 0x11a   :  { %v289_v59 = vpop.xlane.xlu1 %288 }
 0x11b   :  { %v317_v11 = vperm.slane %v289_v59, %v1775_v63 }
 0x11d   :  { %v286_v62 = vpop.xlane.xlu0 %285 }
 0x11e   :  { %v316_v0 = vperm.slane %v286_v62, %v1775_v63 }
 0x120   :  { %v324_v5 = vsel %vm323_vm2, %v316_v0, %v315_v2 }
 0x121   :  { %v326_v15 = vsel %vm325_vm3, %v317_v11, %v324_v5 }
 0x122   :  { %v1773_v56 = vpop.f32.mrf.mxu3  ;;  %v292_v1 = vpop.xlane.xlu1 %291 }
 0x123   :  { %v318_v9 = vperm.slane %v292_v1, %v1775_v63 }
 0x125   :  { %v328_v18 = vsel %vm327_vm4, %v318_v9, %v326_v15  ;;  %v1456_v9 = vld [vmem:[#allocation5] sm:$0xff] }
 0x12a   :  { %v619_v57 = vpop.f32.mrf.mxu3  ;;  %v295_v60 = vpop.xlane.xlu2 %294 }
 0x12b   :  { %v319_v12 = vperm.slane %v295_v60, %v1775_v63 }
 0x12d   :  { %v330_v19 = vsel %vm329_vm5, %v319_v12, %v328_v18 }
 0x132   :  { %v298_v3 = vpop.xlane.xlu2 %297 }
 0x133   :  { %v320_v14 = vperm.slane %v298_v3, %v1775_v63 }
 0x135   :  { %v332_v22 = vsel %vm331_vm6, %v320_v14, %v330_v19 }
 0x13a   :  { %v301_v10 = vpop.xlane.xlu0 %300 }
 0x13b   :  { %v321_v17 = vperm.slane %v301_v10, %v1775_v63 }
 0x13d   :  { %v334_v23 = vsel %vm333_vm7, %v321_v17, %v332_v22 }
 0x142   :  { %v304_v20 = vpop.xlane.xlu1 %303 }
 0x143   :  { %v322_v21 = vperm.slane %v304_v20, %v1775_v63 }
 0x145   :  { %v336_v24 = vsel %vm335_vm8, %v322_v21, %v334_v23 }
 0x146   :  { %v339_v25 = vsel %vm338_vm9, %v336_v24, -inf }
 0x147   :  { %340 = vmax.xlane.f32.xlu2 %v339_v25 }
 0x1ba   :  { %v341_v28 = vpop.xlane.xlu2 %340 }
 0x1bb   :  { %v345_v29 = vperm.slane %v341_v28, 2  ;;  %v344_v30 = vperm.slane %v341_v28, 1  ;;  %v343_v31 = vperm.slane %v341_v28, 0  ;;  %v346_v36 = vperm.slane %v341_v28, 3 }
 0x1bc   :  { %v347_v37 = vperm.slane %v341_v28, 4  ;;  %v350_v39 = vperm.slane %v341_v28, 7  ;;  %v348_v49 = vperm.slane %v341_v28, 5  ;;  %v349_v51 = vperm.slane %v341_v28, 6 }
 0x1bd   :  { %v361_v32 = vsub.f32 %v289_v59, %v345_v29  ;;  %v360_v34 = vsub.f32 %v286_v62, %v344_v30  ;;  %v359_v35 = vsub.f32 %v283_v58, %v343_v31  ;;  %v362_v44 = vsub.f32 %v292_v1, %v346_v36 }
 0x1be   :  { %v363_v45 = vsub.f32 %v295_v60, %v347_v37  ;;  %v366_v46 = vsub.f32 %v304_v20, %v350_v39  ;;  %v364_v58 = vsub.f32 %v298_v3, %v348_v49  ;;  %v365_v59 = vsub.f32 %v301_v10, %v349_v51  ;;  %v1457_v3 = vld [vmem:[#allocation5 + $0x8] sm:$0xff] }
 0x1bf   :  { %v371_v40 = vmul.f32 1.442695, %v361_v32  ;;  %v369_v41 = vmul.f32 1.442695, %v360_v34  ;;  %v367_v42 = vmul.f32 1.442695, %v359_v35  ;;  %183 = vmatpush.bf16.msra.mxu1 %v1457_v3 }
 0x1c0   :  { %v373_v47 = vmul.f32 1.442695, %v362_v44  ;;  %v375_v50 = vmul.f32 1.442695, %v363_v45  ;;  %v381_v54 = vmul.f32 1.442695, %v366_v46 }
 0x1c1   :  { %1478 = vpow2.f32 %v371_v40  ;;  %v377_v60 = vmul.f32 1.442695, %v364_v58  ;;  %v379_v61 = vmul.f32 1.442695, %v365_v59 }
 0x1c2   :  { %1480 = vpow2.f32 %v369_v41 }
 0x1c3   :  { %1482 = vpow2.f32 %v367_v42  ;;  %184 = vmatpush.bf16.msra.mxu1 %v1456_v9 }
 0x1c4   :  { %1484 = vpow2.f32 %v373_v47 }
 0x1c5   :  { %1486 = vpow2.f32 %v375_v50 }
 0x1c6   :  { %1488 = vpow2.f32 %v381_v54  ;;  %1401 = vmatmul.msk.bf16.vlgmr.msra.gmra.mxu1 %vm119_vm0, %v1699_v4 }
 0x1c7   :  { %v1793_v52 = vpop.eup %1478  ;;  %1490 = vpow2.f32 %v377_v60 }
 0x1c8   :  { %v1481_v55 = vpop.eup %1480  ;;  %398 = vperm.xlu2 %1477, %v1793_v52   ;;  %1492 = vpow2.f32 %v379_v61 }
 0x1c9   :  { %v1483_v57 = vpop.eup %1482  ;;  %395 = vperm.xlu1 %1476, %v1481_v55  }
 0x1ca   :  { %392 = vperm.xlu0 %1475, %v1483_v57   ;;  %v1485_v62 = vpop.eup %1484 }
 0x1cb   :  { %v1487_v0 = vpop.eup %1486 }
 0x1cc   :  { %v1796_v1 = vpop.eup %1488 }
 0x1cd   :  { %v1491_v2 = vpop.eup %1490 }
 0x1ce   :  { %v1493_v5 = vpop.eup %1492 }
 0x1d0   :  { %401 = vperm.xlu2 %1477, %v1485_v62  }
 0x1d1   :  { %404 = vperm.xlu1 %1476, %v1487_v0  }
 0x1d2   :  { %413 = vperm.xlu0 %1475, %v1796_v1  }
 0x1d6   :  { %1402 = vmatmul.msk.bf16.gmra.mxu1 %vm119_vm0, %v1710_v6 }
 0x1d8   :  { %407 = vperm.xlu2 %1477, %v1491_v2  }
 0x1d9   :  { %410 = vperm.xlu1 %1476, %v1493_v5  }
 0x1e6   :  { %1403 = vmatmul.msk.bf16.gmra.mxu1 %vm119_vm0, %v1717_v7 }
 0x1f6   :  { %1404 = vmatmul.msk.bf16.gmra.mxu1 %vm119_vm0, %v1724_v8 }
 0x222   :  { %v399_v10 = vpop.permute.xlu2 %398 }
 0x223   :  { %v417_v20 = vperm.slane %v399_v10, %v1775_v63 }
 0x22a   :  { %v402_v14 = vpop.permute.xlu2 %401 }
 0x22b   :  { %v418_v23 = vperm.slane %v402_v14, %v1775_v63 }
 0x232   :  { %v408_v24 = vpop.permute.xlu2 %407 }
 0x233   :  { %v420_v28 = vperm.slane %v408_v24, %v1775_v63 }
 0x23b   :  { %v396_v11 = vpop.permute.xlu1 %395 }
 0x23c   :  { %v393_v12 = vpop.permute.xlu0 %392  ;;  %v416_v15 = vperm.slane %v396_v11, %v1775_v63 }
 0x23d   :  { %v415_v17 = vperm.slane %v393_v12, %v1775_v63 }
 0x23f   :  { %v423_v18 = vsel %vm323_vm2, %v416_v15, %v415_v17 }
 0x240   :  { %v424_v21 = vsel %vm325_vm3, %v417_v20, %v423_v18 }
 0x241   :  { %v425_v4 = vsel %vm327_vm4, %v418_v23, %v424_v21 }
 0x243   :  { %v405_v19 = vpop.permute.xlu1 %404  ;;  %v1825_v58 = vpop.f32.mrf.mxu1 }
 0x244   :  { %v419_v22 = vperm.slane %v405_v19, %v1775_v63  ;;  %v414_v27 = vpop.permute.xlu0 %413 }
 0x245   :  { %v422_v31 = vperm.slane %v414_v27, %v1775_v63 }
 0x246   :  { %v426_v25 = vsel %vm329_vm5, %v419_v22, %v425_v4 }
 0x247   :  { %v427_v32 = vsel %vm331_vm6, %v420_v28, %v426_v25 }
 0x24b   :  { %v411_v29 = vpop.permute.xlu1 %410  ;;  %v1827_v59 = vpop.f32.mrf.mxu1 }
 0x24c   :  { %v421_v30 = vperm.slane %v411_v29, %v1775_v63 }
 0x24e   :  { %v428_v34 = vsel %vm333_vm7, %v421_v30, %v427_v32 }
 0x24f   :  { %v429_v35 = vsel %vm335_vm8, %v422_v31, %v428_v34 }
 0x250   :  { %v431_v36 = vsel %vm338_vm9, %v429_v35, 0.0 }
 0x251   :  { %432 = vadd.xlane.f32.xlu2 %v431_v36 }
 0x2c4   :  { %v433_v6 = vpop.xlane.xlu2 %432 }
 0x2c5   :  { %1494 = vrcp.f32 %v433_v6 }
 0x2cb   :  { %v1495_v37 = vpop.eup %1494 }
 0x2cc   :  { %v437_v39 = vperm.slane %v1495_v37, 1  ;;  %v436_v40 = vperm.slane %v1495_v37, 0  ;;  %v439_v44 = vperm.slane %v1495_v37, 3  ;;  %v438_v45 = vperm.slane %v1495_v37, 2 }
 0x2cd   :  { %v441_v7 = vperm.slane %v1495_v37, 5  ;;  %v440_v49 = vperm.slane %v1495_v37, 4  ;;  %v443_v51 = vperm.slane %v1495_v37, 7  ;;  %v442_v54 = vperm.slane %v1495_v37, 6 }
 0x2ce   :  { %v453_v41 = vmul.f32 %v1481_v55, %v437_v39  ;;  %v452_v42 = vmul.f32 %v1483_v57, %v436_v40  ;;  %v455_v46 = vmul.f32 %v1485_v62, %v439_v44  ;;  %v454_v47 = vmul.f32 %v1793_v52, %v438_v45  ;;  %v1829_v52 = vpop.f32.mrf.mxu1 }
 0x2cf   :  { %v457_v50 = vmul.f32 %v1491_v2, %v441_v7  ;;  %v456_v8 = vmul.f32 %v1487_v0, %v440_v49  ;;  %v459_v55 = vmul.f32 %v1796_v1, %v443_v51  ;;  %v458_v57 = vmul.f32 %v1493_v5, %v442_v54 }
 0x2d0   :  { %467 = vperm.xlu0 %1475, %v453_v41   ;;  %462 = vperm.xlu1 %1476, %v452_v42  }
 0x2d6   :  { %v1831_v60 = vpop.f32.mrf.mxu1 }
 0x2d8   :  { %477 = vperm.xlu0 %1475, %v455_v46   ;;  %472 = vperm.xlu1 %1476, %v454_v47  }
 0x2de   :  { %v1833_v61 = vpop.f32.mrf.mxu1 }
 0x2e0   :  { %487 = vperm.xlu0 %1475, %v457_v50   ;;  %482 = vperm.xlu1 %1476, %v456_v8  }
 0x2e6   :  { %v1839_v9 = vpop.f32.mrf.mxu1 }
 0x2e8   :  { %497 = vperm.xlu0 %1475, %v459_v55   ;;  %492 = vperm.xlu1 %1476, %v458_v57  }
 0x2ee   :  { %v1845_v24 = vpop.f32.mrf.mxu1 }
 0x2f6   :  { %v1851_v49 = vpop.f32.mrf.mxu1 }
 0x342   :  { %v468_v62 = vpop.permute.xlu0 %467  ;;  %v463_v0 = vpop.permute.xlu1 %462 }
 0x343   :  { %v501_v2 = vmul.f32 %v468_v62, %v1827_v59  ;;  %v500_v3 = vmul.f32 %v463_v0, %v1825_v58 }
 0x345   :  { %v515_v1 = vsel %vm280_vm1, %v501_v2, 0.0  ;;  %v508_v5 = vsel %vm280_vm1, %v500_v3, 0.0 }
 0x346   :  { %v516_v10 = vrot.slane %v515_v1, 4  ;;  %v509_v11 = vrot.slane %v508_v5, 4 }
 0x348   :  { %v517_v18 = vadd.f32 %v516_v10, %v515_v1  ;;  %v510_v19 = vadd.f32 %v509_v11, %v508_v5 }
 0x34a   :  { %v478_v12 = vpop.permute.xlu0 %477  ;;  %v473_v14 = vpop.permute.xlu1 %472  ;;  %v518_v4 = vrot.slane %v517_v18, 2  ;;  %v511_v25 = vrot.slane %v510_v19, 2 }
 0x34b   :  { %v503_v15 = vmul.f32 %v478_v12, %v1831_v60  ;;  %v502_v17 = vmul.f32 %v473_v14, %v1829_v52 }
 0x34c   :  { %v519_v35 = vadd.f32 %v518_v4, %v517_v18  ;;  %v512_v36 = vadd.f32 %v511_v25, %v510_v19 }
 0x34d   :  { %v529_v20 = vsel %vm280_vm1, %v503_v15, 0.0  ;;  %v522_v21 = vsel %vm280_vm1, %v502_v17, 0.0 }
 0x34e   :  { %v530_v22 = vrot.slane %v529_v20, 4  ;;  %v523_v23 = vrot.slane %v522_v21, 4  ;;  %v520_v44 = vrot.slane %v519_v35, 1  ;;  %v513_v45 = vrot.slane %v512_v36, 1 }
 0x350   :  { %v524_v27 = vadd.f32 %v523_v23, %v522_v21  ;;  %v531_v28 = vadd.f32 %v530_v22, %v529_v20  ;;  %v521_v0 = vadd.f32 %v520_v44, %v519_v35  ;;  %v514_v2 = vadd.f32 %v513_v45, %v512_v36 }
 0x352   :  { %v525_v29 = vrot.slane %v524_v27, 2  ;;  %v488_v30 = vpop.permute.xlu0 %487  ;;  %v483_v31 = vpop.permute.xlu1 %482  ;;  %v532_v6 = vrot.slane %v531_v28, 2  ;;  %v597_v20 = vsel %vm323_vm2, %v521_v0, %v514_v2 }
 0x353   :  { %v505_v32 = vmul.f32 %v488_v30, %v1839_v9  ;;  %v504_v34 = vmul.f32 %v483_v31, %v1833_v61 }
 0x354   :  { %v526_v40 = vadd.f32 %v525_v29, %v524_v27  ;;  %v533_v7 = vadd.f32 %v532_v6, %v531_v28 }
 0x355   :  { %v543_v37 = vsel %vm280_vm1, %v505_v32, 0.0  ;;  %v536_v39 = vsel %vm280_vm1, %v504_v34, 0.0 }
 0x356   :  { %v544_v41 = vrot.slane %v543_v37, 4  ;;  %v537_v42 = vrot.slane %v536_v39, 4  ;;  %v527_v50 = vrot.slane %v526_v40, 1  ;;  %v534_v1 = vrot.slane %v533_v7, 1 }
 0x358   :  { %v545_v46 = vadd.f32 %v544_v41, %v543_v37  ;;  %v538_v47 = vadd.f32 %v537_v42, %v536_v39  ;;  %v528_v12 = vadd.f32 %v527_v50, %v526_v40  ;;  %v535_v21 = vadd.f32 %v534_v1, %v533_v7 }
 0x35a   :  { %v546_v8 = vrot.slane %v545_v46, 2  ;;  %v539_v51 = vrot.slane %v538_v47, 2  ;;  %v498_v54 = vpop.permute.xlu0 %497  ;;  %v493_v55 = vpop.permute.xlu1 %492  ;;  %v598_v23 = vsel %vm325_vm3, %v528_v12, %v597_v20 }
 0x35b   :  { %v507_v57 = vmul.f32 %v498_v54, %v1851_v49  ;;  %v506_v62 = vmul.f32 %v493_v55, %v1845_v24  ;;  %v599_v31 = vsel %vm327_vm4, %v535_v21, %v598_v23 }
 0x35c   :  { %v540_v3 = vadd.f32 %v539_v51, %v538_v47  ;;  %v547_v5 = vadd.f32 %v546_v8, %v545_v46 }
 0x35d   :  { %v557_v10 = vsel %vm280_vm1, %v507_v57, 0.0  ;;  %v550_v11 = vsel %vm280_vm1, %v506_v62, 0.0 }
 0x35e   :  { %v541_v14 = vrot.slane %v540_v3, 1  ;;  %v558_v15 = vrot.slane %v557_v10, 4  ;;  %v551_v17 = vrot.slane %v550_v11, 4  ;;  %v548_v22 = vrot.slane %v547_v5, 1 }
 0x360   :  { %v559_v18 = vadd.f32 %v558_v15, %v557_v10  ;;  %v552_v19 = vadd.f32 %v551_v17, %v550_v11  ;;  %v542_v4 = vadd.f32 %v541_v14, %v540_v3  ;;  %v549_v30 = vadd.f32 %v548_v22, %v547_v5 }
 0x362   :  { %v560_v25 = vrot.slane %v559_v18, 2  ;;  %v553_v27 = vrot.slane %v552_v19, 2  ;;  %v600_v32 = vsel %vm329_vm5, %v542_v4, %v599_v31 }
 0x363   :  { %v601_v37 = vsel %vm331_vm6, %v549_v30, %v600_v32 }
 0x364   :  { %v561_v28 = vadd.f32 %v560_v25, %v559_v18  ;;  %v554_v29 = vadd.f32 %v553_v27, %v552_v19 }
 0x366   :  { %v562_v34 = vrot.slane %v561_v28, 1  ;;  %v555_v35 = vrot.slane %v554_v29, 1 }
 0x368   :  { %v563_v36 = vadd.f32 %v562_v34, %v561_v28  ;;  %v556_v6 = vadd.f32 %v555_v35, %v554_v29 }
 0x36a   :  { %v602_v39 = vsel %vm333_vm7, %v556_v6, %v601_v37 }
 0x36b   :  { %v603_v40 = vsel %vm335_vm8, %v563_v36, %v602_v39 }
 0x36c   :  { %v618_v41 = vadd.f32 %v1773_v56, %v603_v40 }
 0x36e   :  { %v926_v42 = vpack.c.bf16 %v618_v41, %v618_v41  ;;  %v629_v44 = vperm.slane %v618_v41, 0  ;;  %v623_v45 = vrot.slane %v618_v41, 2  ;;  %v622_v46 = vrot.slane %v618_v41, 1 }
 0x36f   :  { %v628_v47 = vrot.slane %v618_v41, 7  ;;  %v624_v51 = vrot.slane %v618_v41, 3  ;;  %v625_v5 = vrot.slane %v618_v41, 4  ;;  %v626_v15 = vrot.slane %v618_v41, 5 }
 0x370   :  { %1431 = vmatmul.msk.bf16.vlgmr.msrb.gmra.mxu2 %vm280_vm1, %v926_v42  ;;  %v645_v7 = vmul.f32 %v629_v44, %v1740_v13  ;;  %v631_v50 = vperm.slane %v623_v45, 0  ;;  %v630_v8 = vperm.slane %v622_v46, 0  ;;  %v627_v20 = vrot.slane %v618_v41, 6 }
 0x371   :  { %v636_v62 = vperm.slane %v628_v47, 0  ;;  %v632_v2 = vperm.slane %v624_v51, 0  ;;  %v633_v12 = vperm.slane %v625_v5, 0  ;;  %v634_v18 = vperm.slane %v626_v15, 0 }
 0x372   :  { %v653_v54 = vsel %vm280_vm1, %v645_v7, 0.0  ;;  %v647_v55 = vmul.f32 %v631_v50, %v1747_v26  ;;  %v646_v57 = vmul.f32 %v630_v8, %v1742_v16  ;;  %v635_v22 = vperm.slane %v627_v20, 0 }
 0x373   :  { %654 = vadd.xlane.f32.xlu1 %v653_v54  ;;  %v652_v3 = vmul.f32 %v636_v62, %v1769_v53  ;;  %v648_v1 = vmul.f32 %v632_v2, %v1753_v33  ;;  %v649_v14 = vmul.f32 %v633_v12, %v1757_v38  ;;  %v650_v19 = vmul.f32 %v634_v18, %v1761_v43 }
 0x374   :  { %v659_v56 = vsel %vm280_vm1, %v647_v55, 0.0  ;;  %v656_v0 = vsel %vm280_vm1, %v646_v57, 0.0  ;;  %v651_v23 = vmul.f32 %v635_v22, %v1765_v48 }
 0x375   :  { %660 = vadd.xlane.f32.xlu2 %v659_v56  ;;  %657 = vadd.xlane.f32.xlu0 %v656_v0  ;;  %v674_v10 = vsel %vm280_vm1, %v652_v3, 0.0  ;;  %v662_v11 = vsel %vm280_vm1, %v648_v1, 0.0  ;;  %v665_v17 = vsel %vm280_vm1, %v649_v14, 0.0  ;;  %v668_v21 = vsel %vm280_vm1, %v650_v19, 0.0 }
 0x376   :  { %v671_v4 = vsel %vm280_vm1, %v651_v23, 0.0 }
 0x37b   :  { %675 = vadd.xlane.f32.xlu1 %v674_v10 }
 0x37d   :  { %663 = vadd.xlane.f32.xlu2 %v662_v11 }
 0x385   :  { %666 = vadd.xlane.f32.xlu2 %v665_v17 }
 0x38d   :  { %669 = vadd.xlane.f32.xlu2 %v668_v21 }
 0x395   :  { %672 = vadd.xlane.f32.xlu2 %v671_v4 }
 0x3e6   :  { %v655_v31 = vpop.xlane.xlu1 %654 }
 0x3e7   :  { %v685_v36 = vperm.slane %v655_v31, %v1775_v63 }
 0x3e8   :  { %v661_v25 = vpop.xlane.xlu2 %660  ;;  %v658_v32 = vpop.xlane.xlu0 %657 }
 0x3e9   :  { %v686_v34 = vperm.slane %v658_v32, %v1775_v63  ;;  %v687_v6 = vperm.slane %v661_v25, %v1775_v63 }
 0x3eb   :  { %v693_v37 = vsel %vm323_vm2, %v686_v34, %v685_v36 }
 0x3ec   :  { %v694_v44 = vsel %vm325_vm3, %v687_v6, %v693_v37 }
 0x3ee   :  { %v676_v42 = vpop.xlane.xlu1 %675 }
 0x3ef   :  { %v692_v50 = vperm.slane %v676_v42, %v1775_v63 }
 0x3f0   :  { %v664_v27 = vpop.xlane.xlu2 %663 }
 0x3f1   :  { %v688_v39 = vperm.slane %v664_v27, %v1775_v63 }
 0x3f3   :  { %v1882_v28 = vpop.f32.mrf.mxu2  ;;  %v695_v45 = vsel %vm327_vm4, %v688_v39, %v694_v44 }
 0x3f8   :  { %v667_v29 = vpop.xlane.xlu2 %666 }
 0x3f9   :  { %v689_v40 = vperm.slane %v667_v29, %v1775_v63 }
 0x3fb   :  { %v957_v30 = vpop.f32.mrf.mxu2  ;;  %v696_v47 = vsel %vm329_vm5, %v689_v40, %v695_v45 }
 0x400   :  { %v670_v35 = vpop.xlane.xlu2 %669 }
 0x401   :  { %v690_v41 = vperm.slane %v670_v35, %v1775_v63 }
 0x403   :  { %v697_v8 = vsel %vm331_vm6, %v690_v41, %v696_v47 }
 0x408   :  { %v673_v46 = vpop.xlane.xlu2 %672 }
 0x409   :  { %v691_v7 = vperm.slane %v673_v46, %v1775_v63 }
 0x40b   :  { %v698_v51 = vsel %vm333_vm7, %v691_v7, %v697_v8 }
 0x40c   :  { %v699_v54 = vsel %vm335_vm8, %v692_v50, %v698_v51 }
 0x40d   :  { %v701_v55 = vsel %vm338_vm9, %v699_v54, -inf }
 0x40e   :  { %702 = vmax.xlane.f32.xlu2 %v701_v55 }
 0x481   :  { %v703_v57 = vpop.xlane.xlu2 %702 }
 0x482   :  { %v707_v62 = vperm.slane %v703_v57, 2  ;;  %v706_v56 = vperm.slane %v703_v57, 1  ;;  %v705_v0 = vperm.slane %v703_v57, 0  ;;  %v711_v5 = vperm.slane %v703_v57, 6 }
 0x483   :  { %v709_v10 = vperm.slane %v703_v57, 4  ;;  %v708_v11 = vperm.slane %v703_v57, 3  ;;  %v712_v22 = vperm.slane %v703_v57, 7 }
 0x484   :  { %v723_v2 = vsub.f32 %v661_v25, %v707_v62  ;;  %v722_v3 = vsub.f32 %v658_v32, %v706_v56  ;;  %v721_v1 = vsub.f32 %v655_v31, %v705_v0  ;;  %v727_v17 = vsub.f32 %v673_v46, %v711_v5 }
 0x485   :  { %v725_v18 = vsub.f32 %v667_v29, %v709_v10  ;;  %v724_v19 = vsub.f32 %v664_v27, %v708_v11  ;;  %v710_v25 = vperm.slane %v703_v57, 5  ;;  %v728_v32 = vsub.f32 %v676_v42, %v712_v22 }
 0x486   :  { %v733_v12 = vmul.f32 1.442695, %v723_v2  ;;  %v731_v14 = vmul.f32 1.442695, %v722_v3  ;;  %v729_v15 = vmul.f32 1.442695, %v721_v1 }
 0x487   :  { %v741_v20 = vmul.f32 1.442695, %v727_v17  ;;  %v737_v21 = vmul.f32 1.442695, %v725_v18  ;;  %v735_v4 = vmul.f32 1.442695, %v724_v19  ;;  %v726_v29 = vsub.f32 %v670_v35, %v710_v25 }
 0x488   :  { %1496 = vpow2.f32 %v733_v12  ;;  %v743_v34 = vmul.f32 1.442695, %v728_v32 }
 0x489   :  { %1498 = vpow2.f32 %v731_v14  ;;  %v739_v36 = vmul.f32 1.442695, %v726_v29 }
 0x48a   :  { %1500 = vpow2.f32 %v729_v15 }
 0x48b   :  { %1502 = vpow2.f32 %v741_v20 }
 0x48c   :  { %1504 = vpow2.f32 %v737_v21 }
 0x48d   :  { %1506 = vpow2.f32 %v735_v4 }
 0x48e   :  { %v1900_v23 = vpop.eup %1496  ;;  %1508 = vpow2.f32 %v743_v34 }
 0x48f   :  { %v1499_v30 = vpop.eup %1498  ;;  %760 = vperm.xlu2 %1477, %v1900_v23   ;;  %1510 = vpow2.f32 %v739_v36 }
 0x490   :  { %v1501_v31 = vpop.eup %1500  ;;  %757 = vperm.xlu1 %1476, %v1499_v30  }
 0x491   :  { %754 = vperm.xlu0 %1475, %v1501_v31   ;;  %v1503_v27 = vpop.eup %1502 }
 0x492   :  { %v1505_v6 = vpop.eup %1504 }
 0x493   :  { %v1507_v37 = vpop.eup %1506 }
 0x494   :  { %v1509_v39 = vpop.eup %1508 }
 0x495   :  { %v1511_v40 = vpop.eup %1510 }
 0x497   :  { %772 = vperm.xlu2 %1477, %v1503_v27  }
 0x498   :  { %766 = vperm.xlu1 %1476, %v1505_v6  }
 0x499   :  { %763 = vperm.xlu0 %1475, %v1507_v37  }
 0x4a0   :  { %775 = vperm.xlu1 %1476, %v1509_v39  }
 0x4a1   :  { %769 = vperm.xlu0 %1475, %v1511_v40  }
 0x4e9   :  { %v761_v45 = vpop.permute.xlu2 %760 }
 0x4ea   :  { %v779_v8 = vperm.slane %v761_v45, %v1775_v63 }
 0x4f1   :  { %v773_v55 = vpop.permute.xlu2 %772 }
 0x4f2   :  { %v783_v2 = vperm.slane %v773_v55, %v1775_v63 }
 0x502   :  { %v758_v41 = vpop.permute.xlu1 %757 }
 0x503   :  { %v755_v44 = vpop.permute.xlu0 %754  ;;  %v778_v42 = vperm.slane %v758_v41, %v1775_v63 }
 0x504   :  { %v777_v35 = vperm.slane %v755_v44, %v1775_v63 }
 0x506   :  { %v785_v7 = vsel %vm323_vm2, %v778_v42, %v777_v35 }
 0x507   :  { %v786_v54 = vsel %vm325_vm3, %v779_v8, %v785_v7 }
 0x50a   :  { %v767_v46 = vpop.permute.xlu1 %766 }
 0x50b   :  { %v764_v47 = vpop.permute.xlu0 %763  ;;  %v781_v51 = vperm.slane %v767_v46, %v1775_v63 }
 0x50c   :  { %v780_v50 = vperm.slane %v764_v47, %v1775_v63 }
 0x50e   :  { %v787_v57 = vsel %vm327_vm4, %v780_v50, %v786_v54 }
 0x50f   :  { %v788_v3 = vsel %vm329_vm5, %v781_v51, %v787_v57 }
 0x512   :  { %v776_v62 = vpop.permute.xlu1 %775 }
 0x513   :  { %v770_v56 = vpop.permute.xlu0 %769  ;;  %v784_v1 = vperm.slane %v776_v62, %v1775_v63 }
 0x514   :  { %v782_v0 = vperm.slane %v770_v56, %v1775_v63 }
 0x516   :  { %v789_v5 = vsel %vm331_vm6, %v782_v0, %v788_v3 }
 0x517   :  { %v790_v10 = vsel %vm333_vm7, %v783_v2, %v789_v5 }
 0x518   :  { %v791_v11 = vsel %vm335_vm8, %v784_v1, %v790_v10 }
 0x519   :  { %v793_v12 = vsel %vm338_vm9, %v791_v11, 0.0 }
 0x51a   :  { %794 = vadd.xlane.f32.xlu0 %v793_v12 }
 0x58d   :  { %v795_v14 = vpop.xlane.xlu0 %794 }
 0x58e   :  { %1512 = vrcp.f32 %v795_v14 }
 0x594   :  { %v1513_v15 = vpop.eup %1512 }
 0x595   :  { %v799_v17 = vperm.slane %v1513_v15, 1  ;;  %v798_v18 = vperm.slane %v1513_v15, 0  ;;  %v801_v21 = vperm.slane %v1513_v15, 3  ;;  %v800_v22 = vperm.slane %v1513_v15, 2 }
 0x596   :  { %v803_v32 = vperm.slane %v1513_v15, 5  ;;  %v802_v29 = vperm.slane %v1513_v15, 4  ;;  %v805_v41 = vperm.slane %v1513_v15, 7  ;;  %v804_v44 = vperm.slane %v1513_v15, 6 }
 0x597   :  { %v815_v19 = vmul.f32 %v1499_v30, %v799_v17  ;;  %v814_v20 = vmul.f32 %v1501_v31, %v798_v18  ;;  %v817_v4 = vmul.f32 %v1507_v37, %v801_v21  ;;  %v816_v25 = vmul.f32 %v1900_v23, %v800_v22 }
 0x598   :  { %v819_v34 = vmul.f32 %v1511_v40, %v803_v32  ;;  %v818_v36 = vmul.f32 %v1505_v6, %v802_v29  ;;  %v821_v45 = vmul.f32 %v1509_v39, %v805_v41  ;;  %v820_v30 = vmul.f32 %v1503_v27, %v804_v44 }
 0x599   :  { %829 = vperm.xlu1 %1476, %v815_v19   ;;  %824 = vperm.xlu2 %1477, %v814_v20  }
 0x5a1   :  { %839 = vperm.xlu1 %1476, %v817_v4   ;;  %834 = vperm.xlu2 %1477, %v816_v25  }
 0x5a9   :  { %849 = vperm.xlu1 %1476, %v819_v34   ;;  %844 = vperm.xlu2 %1477, %v818_v36  }
 0x5b1   :  { %859 = vperm.xlu1 %1476, %v821_v45   ;;  %854 = vperm.xlu2 %1477, %v820_v30  }
 0x5f3   :  { %v825_v31 = vpop.permute.xlu2 %824 }
 0x5f4   :  { %v862_v37 = vmul.f32 %v825_v31, %v1825_v58 }
 0x5f6   :  { %v870_v6 = vsel %vm280_vm1, %v862_v37, 0.0 }
 0x5f7   :  { %v871_v50 = vrot.slane %v870_v6, 4 }
 0x5f9   :  { %v872_v62 = vadd.f32 %v871_v50, %v870_v6 }
 0x5fb   :  { %v835_v42 = vpop.permute.xlu2 %834  ;;  %v873_v11 = vrot.slane %v872_v62, 2 }
 0x5fc   :  { %v864_v47 = vmul.f32 %v835_v42, %v1829_v52 }
 0x5fd   :  { %v874_v4 = vadd.f32 %v873_v11, %v872_v62 }
 0x5fe   :  { %v884_v27 = vsel %vm280_vm1, %v864_v47, 0.0 }
 0x5ff   :  { %v885_v55 = vrot.slane %v884_v27, 4  ;;  %v875_v45 = vrot.slane %v874_v4, 1 }
 0x601   :  { %v886_v5 = vadd.f32 %v885_v55, %v884_v27 }
 0x603   :  { %v845_v35 = vpop.permute.xlu2 %844  ;;  %v887_v19 = vrot.slane %v886_v5, 2 }
 0x604   :  { %v866_v39 = vmul.f32 %v845_v35, %v1833_v61 }
 0x605   :  { %v888_v36 = vadd.f32 %v887_v19, %v886_v5 }
 0x606   :  { %v898_v56 = vsel %vm280_vm1, %v866_v39, 0.0 }
 0x607   :  { %v899_v10 = vrot.slane %v898_v56, 4 }
 0x609   :  { %v900_v20 = vadd.f32 %v899_v10, %v898_v56 }
 0x60b   :  { %v830_v23 = vpop.permute.xlu1 %829  ;;  %v855_v8 = vpop.permute.xlu2 %854  ;;  %v901_v41 = vrot.slane %v900_v20, 2 }
 0x60c   :  { %v863_v46 = vmul.f32 %v830_v23, %v1827_v59  ;;  %v868_v0 = vmul.f32 %v855_v8, %v1845_v24  ;;  %v889_v23 = vrot.slane %v888_v36, 1 }
 0x60e   :  { %v877_v40 = vsel %vm280_vm1, %v863_v46, 0.0  ;;  %v912_v12 = vsel %vm280_vm1, %v868_v0, 0.0  ;;  %v902_v46 = vadd.f32 %v901_v41, %v900_v20 }
 0x60f   :  { %v878_v7 = vrot.slane %v877_v40, 4  ;;  %v913_v21 = vrot.slane %v912_v12, 4 }
 0x610   :  { %v903_v55 = vrot.slane %v902_v46, 1 }
 0x611   :  { %v879_v51 = vadd.f32 %v878_v7, %v877_v40  ;;  %v914_v44 = vadd.f32 %v913_v21, %v912_v12  ;;  %v876_v40 = vadd.f32 %v875_v45, %v874_v4 }
 0x613   :  { %v840_v54 = vpop.permute.xlu1 %839  ;;  %v880_v3 = vrot.slane %v879_v51, 2  ;;  %v915_v47 = vrot.slane %v914_v44, 2 }
 0x614   :  { %v865_v57 = vmul.f32 %v840_v54, %v1831_v60  ;;  %v890_v54 = vadd.f32 %v889_v23, %v888_v36 }
 0x615   :  { %v881_v15 = vadd.f32 %v880_v3, %v879_v51 }
 0x616   :  { %v891_v2 = vsel %vm280_vm1, %v865_v57, 0.0  ;;  %v916_v57 = vadd.f32 %v915_v47, %v914_v44 }
 0x617   :  { %v892_v1 = vrot.slane %v891_v2, 4  ;;  %v882_v32 = vrot.slane %v881_v15, 1 }
 0x618   :  { %v917_v5 = vrot.slane %v916_v57, 1 }
 0x619   :  { %v893_v14 = vadd.f32 %v892_v1, %v891_v2  ;;  %v883_v31 = vadd.f32 %v882_v32, %v881_v15  ;;  %v904_v1 = vadd.f32 %v903_v55, %v902_v46 }
 0x61a   :  { %v918_v15 = vadd.f32 %v917_v5, %v916_v57 }
 0x61b   :  { %v894_v17 = vrot.slane %v893_v14, 2  ;;  %v850_v18 = vpop.permute.xlu1 %849  ;;  %v935_v27 = vsel %vm323_vm2, %v883_v31, %v876_v40 }
 0x61c   :  { %v867_v22 = vmul.f32 %v850_v18, %v1839_v9  ;;  %v936_v56 = vsel %vm325_vm3, %v890_v54, %v935_v27 }
 0x61d   :  { %v895_v29 = vadd.f32 %v894_v17, %v893_v14 }
 0x61e   :  { %v905_v25 = vsel %vm280_vm1, %v867_v22, 0.0 }
 0x61f   :  { %v906_v34 = vrot.slane %v905_v25, 4  ;;  %v896_v42 = vrot.slane %v895_v29, 1 }
 0x621   :  { %v907_v30 = vadd.f32 %v906_v34, %v905_v25  ;;  %v897_v39 = vadd.f32 %v896_v42, %v895_v29 }
 0x623   :  { %v908_v35 = vrot.slane %v907_v30, 2  ;;  %v860_v37 = vpop.permute.xlu1 %859  ;;  %v937_v0 = vsel %vm327_vm4, %v897_v39, %v936_v56 }
 0x624   :  { %v869_v6 = vmul.f32 %v860_v37, %v1851_v49  ;;  %v938_v11 = vsel %vm329_vm5, %v904_v1, %v937_v0 }
 0x625   :  { %v909_v7 = vadd.f32 %v908_v35, %v907_v30 }
 0x626   :  { %v919_v50 = vsel %vm280_vm1, %v869_v6, 0.0 }
 0x627   :  { %v910_v8 = vrot.slane %v909_v7, 1  ;;  %v920_v51 = vrot.slane %v919_v50, 4 }
 0x629   :  { %v921_v62 = vadd.f32 %v920_v51, %v919_v50  ;;  %v911_v2 = vadd.f32 %v910_v8, %v909_v7 }
 0x62b   :  { %v922_v3 = vrot.slane %v921_v62, 2  ;;  %v939_v12 = vsel %vm331_vm6, %v911_v2, %v938_v11 }
 0x62c   :  { %v940_v18 = vsel %vm333_vm7, %v918_v15, %v939_v12 }
 0x62d   :  { %v923_v10 = vadd.f32 %v922_v3, %v921_v62 }
 0x62f   :  { %v924_v14 = vrot.slane %v923_v10, 1 }
 0x631   :  { %v925_v17 = vadd.f32 %v924_v14, %v923_v10 }
 0x633   :  { %v941_v19 = vsel %vm335_vm8, %v925_v17, %v940_v18 }
 0x634   :  { %v956_v20 = vadd.f32 %v1882_v28, %v941_v19 }
 0x636   :  { %v1264_v21 = vpack.c.bf16 %v956_v20, %v956_v20  ;;  %v967_v22 = vperm.slane %v956_v20, 0  ;;  %v961_v4 = vrot.slane %v956_v20, 2  ;;  %v960_v25 = vrot.slane %v956_v20, 1 }
 0x637   :  { %v966_v32 = vrot.slane %v956_v20, 7  ;;  %v962_v41 = vrot.slane %v956_v20, 3  ;;  %v963_v23 = vrot.slane %v956_v20, 4  ;;  %v964_v6 = vrot.slane %v956_v20, 5 }
 0x638   :  { %1432 = vmatmul.msk.bf16.vlgmr.msrb.gmra.mxu3 %vm280_vm1, %v1264_v21  ;;  %v983_v29 = vmul.f32 %v967_v22, %v1740_v13  ;;  %v969_v34 = vperm.slane %v961_v4, 0  ;;  %v968_v36 = vperm.slane %v960_v25, 0 }
 0x639   :  { %v974_v31 = vperm.slane %v966_v32, 0  ;;  %v970_v35 = vperm.slane %v962_v41, 0  ;;  %v972_v7 = vperm.slane %v964_v6, 0 }
 0x63a   :  { %v991_v44 = vsel %vm280_vm1, %v983_v29, 0.0  ;;  %v985_v45 = vmul.f32 %v969_v34, %v1747_v26  ;;  %v984_v30 = vmul.f32 %v968_v36, %v1742_v16  ;;  %v971_v16 = vperm.slane %v963_v23, 0 }
 0x63b   :  { %992 = vadd.xlane.f32.xlu2 %v991_v44  ;;  %v990_v13 = vmul.f32 %v974_v31, %v1769_v53  ;;  %v986_v37 = vmul.f32 %v970_v35, %v1753_v33  ;;  %v988_v50 = vmul.f32 %v972_v7, %v1761_v43  ;;  %v965_v53 = vrot.slane %v956_v20, 6 }
 0x63c   :  { %v997_v28 = vsel %vm280_vm1, %v985_v45, 0.0  ;;  %v994_v42 = vsel %vm280_vm1, %v984_v30, 0.0  ;;  %v987_v47 = vmul.f32 %v971_v16, %v1757_v38 }
 0x63d   :  { %998 = vadd.xlane.f32.xlu0 %v997_v28  ;;  %995 = vadd.xlane.f32.xlu1 %v994_v42  ;;  %v1012_v46 = vsel %vm280_vm1, %v990_v13, 0.0  ;;  %v1000_v26 = vsel %vm280_vm1, %v986_v37, 0.0  ;;  %v1006_v33 = vsel %vm280_vm1, %v988_v50, 0.0  ;;  %v973_v27 = vperm.slane %v965_v53, 0 }
 0x63e   :  { %v1003_v40 = vsel %vm280_vm1, %v987_v47, 0.0 }
 0x63f   :  { %v989_v39 = vmul.f32 %v973_v27, %v1765_v48 }
 0x641   :  { %v1009_v8 = vsel %vm280_vm1, %v989_v39, 0.0 }
 0x643   :  { %1013 = vadd.xlane.f32.xlu2 %v1012_v46 }
 0x645   :  { %1001 = vadd.xlane.f32.xlu0 %v1000_v26 }
 0x64d   :  { %1004 = vadd.xlane.f32.xlu0 %v1003_v40 }
 0x655   :  { %1007 = vadd.xlane.f32.xlu0 %v1006_v33 }
 0x65d   :  { %1010 = vadd.xlane.f32.xlu0 %v1009_v8 }
 0x6ae   :  { %v993_v62 = vpop.xlane.xlu2 %992 }
 0x6af   :  { %v1023_v2 = vperm.slane %v993_v62, %v1775_v63 }
 0x6b0   :  { %v999_v51 = vpop.xlane.xlu0 %998  ;;  %v996_v56 = vpop.xlane.xlu1 %995 }
 0x6b1   :  { %v1024_v43 = vperm.slane %v996_v56, %v1775_v63  ;;  %v1025_v3 = vperm.slane %v999_v51, %v1775_v63 }
 0x6b3   :  { %v1031_v48 = vsel %vm323_vm2, %v1024_v43, %v1023_v2 }
 0x6b4   :  { %v1032_v12 = vsel %vm325_vm3, %v1025_v3, %v1031_v48 }
 0x6b6   :  { %v1014_v11 = vpop.xlane.xlu2 %1013 }
 0x6b7   :  { %v1030_v19 = vperm.slane %v1014_v11, %v1775_v63 }
 0x6b8   :  { %v1002_v54 = vpop.xlane.xlu0 %1001 }
 0x6b9   :  { %v1026_v1 = vperm.slane %v1002_v54, %v1775_v63 }
 0x6bb   :  { %v1961_v38 = vpop.f32.mrf.mxu3  ;;  %v1033_v14 = vsel %vm327_vm4, %v1026_v1, %v1032_v12 }
 0x6c0   :  { %v1005_v55 = vpop.xlane.xlu0 %1004 }
 0x6c1   :  { %v1027_v5 = vperm.slane %v1005_v55, %v1775_v63 }
 0x6c3   :  { %v1295_v57 = vpop.f32.mrf.mxu3  ;;  %v1034_v17 = vsel %vm329_vm5, %v1027_v5, %v1033_v14 }
 0x6c8   :  { %v1008_v0 = vpop.xlane.xlu0 %1007 }
 0x6c9   :  { %v1028_v10 = vperm.slane %v1008_v0, %v1775_v63 }
 0x6cb   :  { %v1035_v20 = vsel %vm331_vm6, %v1028_v10, %v1034_v17 }
 0x6d0   :  { %v1011_v15 = vpop.xlane.xlu0 %1010 }
 0x6d1   :  { %v1029_v18 = vperm.slane %v1011_v15, %v1775_v63 }
 0x6d3   :  { %v1036_v21 = vsel %vm333_vm7, %v1029_v18, %v1035_v20 }
 0x6d4   :  { %v1037_v22 = vsel %vm335_vm8, %v1030_v19, %v1036_v21 }
 0x6d5   :  { %v1039_v4 = vsel %vm338_vm9, %v1037_v22, -inf }
 0x6d6   :  { %1040 = vmax.xlane.f32.xlu1 %v1039_v4 }
 0x749   :  { %v1041_v25 = vpop.xlane.xlu1 %1040 }
 0x74a   :  { %v1045_v32 = vperm.slane %v1041_v25, 2  ;;  %v1044_v29 = vperm.slane %v1041_v25, 1  ;;  %v1043_v34 = vperm.slane %v1041_v25, 0  ;;  %v1049_v45 = vperm.slane %v1041_v25, 6 }
 0x74b   :  { %v1047_v30 = vperm.slane %v1041_v25, 4  ;;  %v1046_v31 = vperm.slane %v1041_v25, 3  ;;  %v1050_v16 = vperm.slane %v1041_v25, 7  ;;  %v1048_v40 = vperm.slane %v1041_v25, 5 }
 0x74c   :  { %v1061_v36 = vsub.f32 %v999_v51, %v1045_v32  ;;  %v1060_v41 = vsub.f32 %v996_v56, %v1044_v29  ;;  %v1059_v44 = vsub.f32 %v993_v62, %v1043_v34  ;;  %v1065_v13 = vsub.f32 %v1011_v15, %v1049_v45 }
 0x74d   :  { %v1063_v37 = vsub.f32 %v1005_v55, %v1047_v30  ;;  %v1062_v23 = vsub.f32 %v1002_v54, %v1046_v31  ;;  %v1066_v53 = vsub.f32 %v1014_v11, %v1050_v16  ;;  %v1064_v33 = vsub.f32 %v1008_v0, %v1048_v40 }
 0x74e   :  { %v1071_v28 = vmul.f32 1.442695, %v1061_v36  ;;  %v1069_v42 = vmul.f32 1.442695, %v1060_v41  ;;  %v1067_v35 = vmul.f32 1.442695, %v1059_v44 }
 0x74f   :  { %v1079_v46 = vmul.f32 1.442695, %v1065_v13  ;;  %v1075_v26 = vmul.f32 1.442695, %v1063_v37  ;;  %v1073_v6 = vmul.f32 1.442695, %v1062_v23 }
 0x750   :  { %1514 = vpow2.f32 %v1071_v28  ;;  %v1081_v27 = vmul.f32 1.442695, %v1066_v53  ;;  %v1077_v8 = vmul.f32 1.442695, %v1064_v33 }
 0x751   :  { %1516 = vpow2.f32 %v1069_v42 }
 0x752   :  { %1518 = vpow2.f32 %v1067_v35 }
 0x753   :  { %1520 = vpow2.f32 %v1079_v46 }
 0x754   :  { %1522 = vpow2.f32 %v1075_v26 }
 0x755   :  { %1524 = vpow2.f32 %v1073_v6 }
 0x756   :  { %v1979_v47 = vpop.eup %1514  ;;  %1526 = vpow2.f32 %v1081_v27  ;;  %v1467_v27 = vld [vmem:[#allocation7 + $0x18] sm:$0xff] }
 0x757   :  { %v1517_v7 = vpop.eup %1516  ;;  %1098 = vperm.xlu1 %1476, %v1979_v47   ;;  %1528 = vpow2.f32 %v1077_v8  ;;  %1337 = vmatpush.bf16.msra.mxu2 %v1467_v27 }
 0x758   :  { %v1519_v50 = vpop.eup %1518  ;;  %1095 = vperm.xlu2 %1477, %v1517_v7  }
 0x759   :  { %1092 = vperm.xlu0 %1475, %v1519_v50   ;;  %v1521_v39 = vpop.eup %1520 }
 0x75a   :  { %v1523_v51 = vpop.eup %1522 }
 0x75b   :  { %v1525_v54 = vpop.eup %1524 }
 0x75c   :  { %v1527_v55 = vpop.eup %1526 }
 0x75d   :  { %v1529_v57 = vpop.eup %1528 }
 0x75f   :  { %1110 = vperm.xlu1 %1476, %v1521_v39  }
 0x760   :  { %1104 = vperm.xlu2 %1477, %v1523_v51  }
 0x761   :  { %1101 = vperm.xlu0 %1475, %v1525_v54  }
 0x768   :  { %1113 = vperm.xlu2 %1477, %v1527_v55  }
 0x769   :  { %1107 = vperm.xlu0 %1475, %v1529_v57  }
 0x7b2   :  { %v1096_v62 = vpop.permute.xlu2 %1095 }
 0x7b3   :  { %v1116_v48 = vperm.slane %v1096_v62, %v1775_v63  ;;  %v1465_v62 = vld [vmem:[#allocation7 + $0x8] sm:$0xff] }
 0x7ba   :  { %v1105_v2 = vpop.permute.xlu2 %1104 }
 0x7bb   :  { %v1119_v15 = vperm.slane %v1105_v2, %v1775_v63 }
 0x7c2   :  { %v1114_v17 = vpop.permute.xlu2 %1113 }
 0x7c3   :  { %v1122_v22 = vperm.slane %v1114_v17, %v1775_v63 }
 0x7c9   :  { %v1099_v43 = vpop.permute.xlu1 %1098 }
 0x7ca   :  { %v1117_v1 = vperm.slane %v1099_v43, %v1775_v63 }
 0x7cb   :  { %v1093_v56 = vpop.permute.xlu0 %1092 }
 0x7cc   :  { %v1115_v0 = vperm.slane %v1093_v56, %v1775_v63 }
 0x7ce   :  { %v1123_v5 = vsel %vm323_vm2, %v1116_v48, %v1115_v0 }
 0x7cf   :  { %v1124_v11 = vsel %vm325_vm3, %v1117_v1, %v1123_v5 }
 0x7d1   :  { %v1111_v12 = vpop.permute.xlu1 %1110 }
 0x7d2   :  { %v1121_v20 = vperm.slane %v1111_v12, %v1775_v63 }
 0x7d3   :  { %v1102_v3 = vpop.permute.xlu0 %1101 }
 0x7d4   :  { %v1118_v10 = vperm.slane %v1102_v3, %v1775_v63 }
 0x7d6   :  { %v1125_v14 = vsel %vm327_vm4, %v1118_v10, %v1124_v11 }
 0x7d7   :  { %v1126_v21 = vsel %vm329_vm5, %v1119_v15, %v1125_v14 }
 0x7db   :  { %v1108_v18 = vpop.permute.xlu0 %1107 }
 0x7dc   :  { %v1120_v19 = vperm.slane %v1108_v18, %v1775_v63 }
 0x7de   :  { %v1127_v4 = vsel %vm331_vm6, %v1120_v19, %v1126_v21 }
 0x7df   :  { %v1128_v25 = vsel %vm333_vm7, %v1121_v20, %v1127_v4 }
 0x7e0   :  { %v1129_v32 = vsel %vm335_vm8, %v1122_v22, %v1128_v25 }
 0x7e1   :  { %v1131_v29 = vsel %vm338_vm9, %v1129_v32, 0.0 }
 0x7e2   :  { %1132 = vadd.xlane.f32.xlu0 %v1131_v29 }
 0x855   :  { %v1133_v34 = vpop.xlane.xlu0 %1132 }
 0x856   :  { %1530 = vrcp.f32 %v1133_v34 }
 0x85c   :  { %v1531_v36 = vpop.eup %1530 }
 0x85d   :  { %v1137_v41 = vperm.slane %v1531_v36, 1  ;;  %v1136_v44 = vperm.slane %v1531_v36, 0  ;;  %v1139_v31 = vperm.slane %v1531_v36, 3  ;;  %v1138_v63 = vperm.slane %v1531_v36, 2 }
 0x85e   :  { %v1141_v35 = vperm.slane %v1531_v36, 5  ;;  %v1140_v13 = vperm.slane %v1531_v36, 4  ;;  %v1143_v46 = vperm.slane %v1531_v36, 7  ;;  %v1142_v26 = vperm.slane %v1531_v36, 6 }
 0x85f   :  { %v1153_v45 = vmul.f32 %v1517_v7, %v1137_v41  ;;  %v1152_v30 = vmul.f32 %v1519_v50, %v1136_v44  ;;  %v1155_v28 = vmul.f32 %v1525_v54, %v1139_v31  ;;  %v1154_v42 = vmul.f32 %v1979_v47, %v1138_v63 }
 0x860   :  { %v1157_v37 = vmul.f32 %v1529_v57, %v1141_v35  ;;  %v1156_v23 = vmul.f32 %v1523_v51, %v1140_v13  ;;  %v1159_v16 = vmul.f32 %v1527_v55, %v1143_v46  ;;  %v1158_v6 = vmul.f32 %v1521_v39, %v1142_v26  ;;  %v1466_v55 = vld [vmem:[#allocation7 + $0x10] sm:$0xff] }
 0x861   :  { %1167 = vperm.xlu2 %1477, %v1153_v45   ;;  %1162 = vperm.xlu1 %1476, %v1152_v30  }
 0x862   :  { %1338 = vmatpush.bf16.msra.mxu2 %v1466_v55 }
 0x866   :  { %1339 = vmatpush.bf16.msra.mxu2 %v1465_v62 }
 0x869   :  { %1177 = vperm.xlu2 %1477, %v1155_v28   ;;  %1172 = vperm.xlu1 %1476, %v1154_v42  }
 0x871   :  { %1187 = vperm.xlu2 %1477, %v1157_v37   ;;  %1182 = vperm.xlu1 %1476, %v1156_v23  }
 0x879   :  { %1197 = vperm.xlu2 %1477, %v1159_v16   ;;  %1192 = vperm.xlu1 %1476, %v1158_v6  }
 0x8bb   :  { %v1168_v40 = vpop.permute.xlu2 %1167 }
 0x8bc   :  { %v1201_v33 = vmul.f32 %v1168_v40, %v1827_v59 }
 0x8be   :  { %v1215_v51 = vsel %vm280_vm1, %v1201_v33, 0.0 }
 0x8bf   :  { %v1216_v56 = vrot.slane %v1215_v51, 4 }
 0x8c1   :  { %v1217_v5 = vadd.f32 %v1216_v56, %v1215_v51 }
 0x8c3   :  { %v1178_v7 = vpop.permute.xlu2 %1177 }
 0x8c4   :  { %v1203_v54 = vmul.f32 %v1178_v7, %v1831_v60  ;;  %v1464_v60 = vld [vmem:[#allocation7] sm:$0xff] }
 0x8c5   :  { %1340 = vmatpush.bf16.msra.mxu2 %v1464_v60 }
 0x8cb   :  { %v1188_v50 = vpop.permute.xlu2 %1187 }
 0x8cc   :  { %v1205_v59 = vmul.f32 %v1188_v50, %v1839_v9  ;;  %v1218_v9 = vrot.slane %v1217_v5, 2 }
 0x8ce   :  { %v1243_v11 = vsel %vm280_vm1, %v1205_v59, 0.0  ;;  %v1219_v32 = vadd.f32 %v1218_v9, %v1217_v5 }
 0x8cf   :  { %v1244_v19 = vrot.slane %v1243_v11, 4 }
 0x8d0   :  { %v1220_v63 = vrot.slane %v1219_v32, 1 }
 0x8d1   :  { %v1245_v34 = vadd.f32 %v1244_v19, %v1243_v11 }
 0x8d2   :  { %v1221_v6 = vadd.f32 %v1220_v63, %v1219_v32 }
 0x8d3   :  { %v1163_v53 = vpop.permute.xlu1 %1162  ;;  %v1198_v43 = vpop.permute.xlu2 %1197  ;;  %v1246_v42 = vrot.slane %v1245_v34, 2 }
 0x8d4   :  { %v1200_v47 = vmul.f32 %v1163_v53, %v1825_v58  ;;  %v1229_v58 = vsel %vm280_vm1, %v1203_v54, 0.0  ;;  %v1207_v48 = vmul.f32 %v1198_v43, %v1851_v49 }
 0x8d5   :  { %v1230_v10 = vrot.slane %v1229_v58, 4  ;;  %v1247_v7 = vadd.f32 %v1246_v42, %v1245_v34 }
 0x8d6   :  { %v1208_v8 = vsel %vm280_vm1, %v1200_v47, 0.0 }
 0x8d7   :  { %v1209_v39 = vrot.slane %v1208_v8, 4  ;;  %v1231_v18 = vadd.f32 %v1230_v10, %v1229_v58  ;;  %v1248_v51 = vrot.slane %v1247_v7, 1 }
 0x8d9   :  { %v1210_v0 = vadd.f32 %v1209_v39, %v1208_v8  ;;  %v1232_v29 = vrot.slane %v1231_v18, 2  ;;  %v1249_v56 = vadd.f32 %v1248_v51, %v1247_v7 }
 0x8db   :  { %v1173_v57 = vpop.permute.xlu1 %1172  ;;  %v1211_v14 = vrot.slane %v1210_v0, 2  ;;  %v1233_v28 = vadd.f32 %v1232_v29, %v1231_v18 }
 0x8dc   :  { %v1202_v2 = vmul.f32 %v1173_v57, %v1829_v52  ;;  %v1257_v52 = vsel %vm280_vm1, %v1207_v48, 0.0 }
 0x8dd   :  { %v1258_v49 = vrot.slane %v1257_v52, 4  ;;  %v1212_v21 = vadd.f32 %v1211_v14, %v1210_v0  ;;  %v1234_v40 = vrot.slane %v1233_v28, 1 }
 0x8de   :  { %v1222_v3 = vsel %vm280_vm1, %v1202_v2, 0.0 }
 0x8df   :  { %v1223_v1 = vrot.slane %v1222_v3, 4  ;;  %v1259_v41 = vadd.f32 %v1258_v49, %v1257_v52  ;;  %v1213_v44 = vrot.slane %v1212_v21, 1 }
 0x8e1   :  { %v1224_v12 = vadd.f32 %v1223_v1, %v1222_v3  ;;  %v1260_v13 = vrot.slane %v1259_v41, 2  ;;  %v1214_v37 = vadd.f32 %v1213_v44, %v1212_v21 }
 0x8e3   :  { %v1225_v15 = vrot.slane %v1224_v12, 2  ;;  %v1183_v17 = vpop.permute.xlu1 %1182  ;;  %v1261_v53 = vadd.f32 %v1260_v13, %v1259_v41  ;;  %v1273_v47 = vsel %vm323_vm2, %v1221_v6, %v1214_v37 }
 0x8e4   :  { %v1204_v20 = vmul.f32 %v1183_v17, %v1833_v61 }
 0x8e5   :  { %v1226_v4 = vadd.f32 %v1225_v15, %v1224_v12  ;;  %v1262_v55 = vrot.slane %v1261_v53, 1 }
 0x8e6   :  { %v1236_v22 = vsel %vm280_vm1, %v1204_v20, 0.0 }
 0x8e7   :  { %v1237_v25 = vrot.slane %v1236_v22, 4  ;;  %v1227_v45 = vrot.slane %v1226_v4, 1  ;;  %v1263_v2 = vadd.f32 %v1262_v55, %v1261_v53 }
 0x8e9   :  { %v1238_v36 = vadd.f32 %v1237_v25, %v1236_v22  ;;  %v1228_v46 = vadd.f32 %v1227_v45, %v1226_v4 }
 0x8eb   :  { %v1239_v30 = vrot.slane %v1238_v36, 2  ;;  %v1193_v31 = vpop.permute.xlu1 %1192  ;;  %v1274_v33 = vsel %vm325_vm3, %v1228_v46, %v1273_v47 }
 0x8ec   :  { %v1206_v61 = vmul.f32 %v1193_v31, %v1845_v24  ;;  %v1235_v24 = vadd.f32 %v1234_v40, %v1233_v28 }
 0x8ed   :  { %v1240_v35 = vadd.f32 %v1239_v30, %v1238_v36 }
 0x8ee   :  { %v1250_v23 = vsel %vm280_vm1, %v1206_v61, 0.0  ;;  %v1275_v39 = vsel %vm327_vm4, %v1235_v24, %v1274_v33 }
 0x8ef   :  { %v1241_v26 = vrot.slane %v1240_v35, 1  ;;  %v1251_v16 = vrot.slane %v1250_v23, 4 }
 0x8f1   :  { %v1252_v50 = vadd.f32 %v1251_v16, %v1250_v23  ;;  %v1242_v27 = vadd.f32 %v1241_v26, %v1240_v35 }
 0x8f3   :  { %v1253_v8 = vrot.slane %v1252_v50, 2  ;;  %v1276_v57 = vsel %vm329_vm5, %v1242_v27, %v1275_v39 }
 0x8f4   :  { %v1277_v58 = vsel %vm331_vm6, %v1249_v56, %v1276_v57 }
 0x8f5   :  { %v1254_v54 = vadd.f32 %v1253_v8, %v1252_v50 }
 0x8f7   :  { %v1255_v62 = vrot.slane %v1254_v54, 1 }
 0x8f9   :  { %v1256_v43 = vadd.f32 %v1255_v62, %v1254_v54 }
 0x8fb   :  { %v1278_v59 = vsel %vm333_vm7, %v1256_v43, %v1277_v58 }
 0x8fc   :  { %v1279_v0 = vsel %vm335_vm8, %v1263_v2, %v1278_v59 }
 0x8fd   :  { %v1294_v3 = vadd.f32 %v1961_v38, %v1279_v0 }
 0x8ff   :  { %v1297_v48 = vpack.c.bf16 %v1294_v3, %v1294_v3 }
 0x901   :  { %1449 = vmatmul.msk.bf16.vlgmr.msra.gmra.mxu2 %vm280_vm1, %v1297_v48 }
 0x984   :  { %v1342_v1 = vpop.f32.mrf.mxu2 }
 0x985   :  { %1346 = vst [vmem:[#allocation8] sm:$0xff] %v1342_v1 }
 0x986   :  { %1357 = dma.vmem_to_hbm [thread:$0]  %s1353_s11, 128, %s1355_s14, [#allocation4]  }
 0x98c   :  { %v1344_v60 = vpop.f32.mrf.mxu2 }
 0x98d   :  { %1632 = dma.done.wait [#allocation4], 128  }
 0x98e   :  { %1633 = vsyncadd [#allocation4], 4294967168 }
 0x98f   :  { %1362 = vsyncpa [#allocation3], 1 }
 0x990   :  { %1363 = vsyncpa [#allocation6], 1 }
 0x991   :  { %1364 = vsyncpa [#allocation4], 1 }

</bundles_post_ra>
